<compile_context>
chip_gen: v7x
topology: tpu7x:2x2x1
jax: 0.10.0
libtpu: 0.0.40
codegen_flags: <defaults>
</compile_context>

<pallas_src>
import math
import functools

import jax
import jax.numpy as jnp
from jax.experimental import pallas as pl
from jax.experimental.pallas import tpu as pltpu

LN_EPS = 1e-5          # torch.nn.LayerNorm default
NEG_INF = -1e30        # stands in for float('-inf'); exp() underflows to 0 identically

# dot_general dimension_numbers
_MM2D = (((1,), (0,)), ((), ()))        # (M,K) @ (K,N)        -> (M,N)
_BMM_NN = (((2,), (1,)), ((0,), (0,)))  # (b,M,K) @ (b,K,N)    -> (b,M,N)
_BMM_NT = (((2,), (2,)), ((0,), (0,)))  # (b,M,K) @ (b,N,K)^T  -> (b,M,N)


def _mm(a, w, dims=_MM2D):
    """MXU matmul: bf16 inputs, f32 accumulation."""
    return jax.lax.dot_general(
        a.astype(jnp.bfloat16), w.astype(jnp.bfloat16),
        dimension_numbers=dims, preferred_element_type=jnp.float32)


def _layer_norm(x, w, b):
    mu = jnp.mean(x, axis=-1, keepdims=True)
    var = jnp.mean((x - mu) ** 2, axis=-1, keepdims=True)
    return (x - mu) * jax.lax.rsqrt(var + LN_EPS) * w + b


# ---------------------------------------------------------------- kernel ----

def _fused_transformer_kernel(
        x_ref, pe_ref, wqkv_ref, wo_ref, w1_ref, b1_ref, w2_ref, vec_ref,
        dec_w_ref, dec_b_ref, out_ref, x_scr, *, nhead):
    """Grid (batch_block, layer).  A (B_blk, S, E) activation block lives in
    `x_scr` (VMEM) across the layer axis; per-layer weights arrive via the
    layer grid axis.  Layer 0 adds the positional encoding; the last layer
    step also runs the decoder + log_softmax.

    NOTE: out_ref's block index depends only on the batch grid axis, so the
    output block stays resident across the whole layer axis and is written
    only at the final layer step (accumulator-output semantics).  Do not
    reorder the grid axes without revisiting this.
    TODO(synk): all dropout layers are treated as identity (inference mode)."""
    l = pl.program_id(1)
    nlayers = pl.num_programs(1)
    B, S, E = x_scr.shape
    hd = E // nhead
    M = B * S

    # ---- first layer step: positional-encoding add ----
    @pl.when(l == 0)
    def _():
        x_scr[...] = x_ref[...] + pe_ref[...][None, :, :]

    x = x_scr[...].reshape(M, E)                               # (M, E) f32
    xb = x.astype(jnp.bfloat16)

    vec = vec_ref[...]                                         # (9, E) f32
    bq, bk, bv = vec[0:1], vec[1:2], vec[2:3]
    bo, ln1w, ln1b = vec[3:4], vec[4:5], vec[5:6]
    b2, ln2w, ln2b = vec[6:7], vec[7:8], vec[8:9]

    # ---- fused QKV projection: one lane-dense (M,E)@(E,3E) MXU pass ----
    # (wq / bq are pre-scaled by 1/sqrt(hd) in the wrapper)
    qkv = _mm(xb, wqkv_ref[...])                               # (M, 3E) f32
    qb = (qkv[:, 0 * E:1 * E] + bq).astype(jnp.bfloat16)
    kb = (qkv[:, 1 * E:2 * E] + bk).astype(jnp.bfloat16)
    vb = (qkv[:, 2 * E:3 * E] + bv).astype(jnp.bfloat16)

    def split_heads(t):                                        # (M, E) -> (B*h, S, hd)
        return (t.reshape(B, S, nhead, hd).transpose(0, 2, 1, 3)
                 .reshape(B * nhead, S, hd))

    qh, kh, vh = split_heads(qb), split_heads(kb), split_heads(vb)

    # ---- scaled-dot-product attention, heads folded into the batch dim ----
    s = jax.lax.dot_general(qh, kh, _BMM_NT,
                            preferred_element_type=jnp.float32)    # (B*h, S, S)
    row = jax.lax.broadcasted_iota(jnp.int32, (S, S), 0)
    col = jax.lax.broadcasted_iota(jnp.int32, (S, S), 1)
    s = jnp.where((col <= row)[None, :, :], s, NEG_INF)            # fused causal mask
    mx = jnp.max(s, axis=-1, keepdims=True)
    p = jnp.exp(s - mx)
    p = p / jnp.sum(p, axis=-1, keepdims=True)                     # exact softmax

    ctx = jax.lax.dot_general(p.astype(jnp.bfloat16), vh, _BMM_NN,
                              preferred_element_type=jnp.float32)  # (B*h, S, hd)

    # merge heads -> (M, E), then one lane-dense (M,E)@(E,E) out-projection
    ctx2 = ctx.reshape(B, nhead, S, hd).transpose(0, 2, 1, 3).reshape(M, E)
    attn = _mm(ctx2, wo_ref[...]) + bo                             # (M, E)

    y = _layer_norm(x + attn, ln1w, ln1b)                          # norm1 (post-norm)

    # ---- feed-forward (ReLU) ----
    h1 = jnp.maximum(_mm(y, w1_ref[...]) + b1_ref[...], 0.0)
    ff = _mm(h1, w2_ref[...]) + b2
    y2 = _layer_norm(y + ff, ln2w, ln2b)                           # norm2
    x_scr[...] = y2.reshape(B, S, E)

    # ---- last layer step: decoder Linear + log_softmax ----
    @pl.when(l == nlayers - 1)
    def _():
        logits = _mm(y2, dec_w_ref[...]) + dec_b_ref[...]
        m2 = jnp.max(logits, axis=-1, keepdims=True)
        lse = m2 + jnp.log(jnp.sum(jnp.exp(logits - m2), axis=-1, keepdims=True))
        out_ref[...] = (logits - lse).reshape(B, S, E)


# ---------------------------------------------------------------- wrapper ---

def init_params(key, n_chars, nhead, nhid, nlayers):
    E = n_chars
    initrange = 0.1
    keys = jax.random.split(key, nlayers * 4 + 1)
    layers = []
    for i in range(nlayers):
        kq, ko, k1, k2 = keys[4 * i:4 * i + 4]
        layers.append(dict(
            wqkv_t=jax.random.uniform(kq, (E, 3 * E), jnp.float32, -initrange, initrange),
            bqkv=jnp.zeros((3 * E,), jnp.float32),
            wo_t=jax.random.uniform(ko, (E, E), jnp.float32, -initrange, initrange),
            bo=jnp.zeros((E,), jnp.float32),
            ln1w=jnp.ones((E,), jnp.float32), ln1b=jnp.zeros((E,), jnp.float32),
            w1_t=jax.random.uniform(k1, (E, nhid), jnp.float32, -initrange, initrange),
            b1=jnp.zeros((nhid,), jnp.float32),
            w2_t=jax.random.uniform(k2, (nhid, E), jnp.float32, -initrange, initrange),
            b2=jnp.zeros((E,), jnp.float32),
            ln2w=jnp.ones((E,), jnp.float32), ln2b=jnp.zeros((E,), jnp.float32),
        ))
    return dict(
        layers=layers,
        dec_w_t=jax.random.uniform(keys[-1], (E, E), jnp.float32, -initrange, initrange),
        dec_b=jnp.zeros((E,), jnp.float32),
    )


def _pick_batch_block(N, S, E, nhead, nhid,
                      target_m=512, vmem_budget=40 * 1024 * 1024):
    """Largest divisor of N whose per-step working set fits a conservative
    (v7x-sized) VMEM budget; capped once B*S reaches an MXU-friendly M."""
    best = 1
    for b in range(1, N + 1):
        if N % b:
            continue
        act = 3 * b * S * E * 4                      # scratch + in/out activation blocks
        scores = 2 * b * nhead * S * S * 4           # scores + probabilities (f32)
        qkv = 2 * b * S * 3 * E * 4                  # fused-QKV intermediates
        weights = 2 * 2 * (3 * E * E + E * E + 2 * E * nhid)   # bf16, double-buffered
        if act + scores + qkv + weights > vmem_budget:
            break
        best = b
        if b * S >= target_m:
            break
    return best


def transformer_forward(src, params, nhead):
    """src: (S, N, E) float32, PyTorch seq-first convention; returns (S, N, E) log-probs."""
    S, N, E = src.shape
    layers = params["layers"]
    L = len(layers)
    hd = E // nhead
    nhid = layers[0]["w1_t"].shape[1]

    x = jnp.transpose(src, (1, 0, 2))                     # glue -> (N, S, E)

    # positional-encoding table (S, E); broadcast over batch happens in-kernel
    pos = jnp.arange(S, dtype=jnp.float32)[:, None]
    div = jnp.exp(jnp.arange(0, E, 2, dtype=jnp.float32) * (-math.log(10000.0) / E))
    ang = pos * div
    pe = jnp.stack([jnp.sin(ang), jnp.cos(ang)], axis=-1).reshape(S, E)

    stack = lambda k: jnp.stack([lyr[k] for lyr in layers], axis=0)

    # ---- weight prep (host-side glue, folded by jit) ----
    # fold 1/sqrt(hd) attention scale into the Q third of the fused QKV weight/bias
    scale = 1.0 / math.sqrt(hd)
    col_scale = jnp.concatenate(
        [jnp.full((E,), scale, jnp.float32), jnp.ones((2 * E,), jnp.float32)])
    wqkv = (stack("wqkv_t") * col_scale[None, None, :]).astype(jnp.bfloat16)   # (L,E,3E)
    bqkv = stack("bqkv") * col_scale[None, :]                                  # (L,3E)

    # pack the small per-layer vectors into one (L, 9, E) tensor
    vec = jnp.stack([bqkv[:, 0:E], bqkv[:, E:2 * E], bqkv[:, 2 * E:3 * E],
                     stack("bo"), stack("ln1w"), stack("ln1b"),
                     stack("b2"), stack("ln2w"), stack("ln2b")], axis=1)

    wo = stack("wo_t").astype(jnp.bfloat16)               # (L, E, E)
    w1 = stack("w1_t").astype(jnp.bfloat16)               # (L, E, nhid)
    b1 = stack("b1").reshape(L, 1, nhid)
    w2 = stack("w2_t").astype(jnp.bfloat16)               # (L, nhid, E)
    dec_w = params["dec_w_t"].astype(jnp.bfloat16)        # (E, E)
    dec_b = params["dec_b"].reshape(1, E)

    B_blk = _pick_batch_block(N, S, E, nhead, nhid)
    grid = (N // B_blk, L)

    per_batch = pl.BlockSpec((B_blk, S, E), lambda n, l: (n, 0, 0))

    def per_layer(shape):
        nd = len(shape)
        return pl.BlockSpec((None,) + shape, lambda n, l, _nd=nd: (l,) + (0,) * _nd)

    def const(shape):
        nd = len(shape)
        return pl.BlockSpec(shape, lambda n, l, _nd=nd: (0,) * _nd)

    kernel = functools.partial(_fused_transformer_kernel, nhead=nhead)

    out = pl.pallas_call(
        kernel,
        out_shape=jax.ShapeDtypeStruct((N, S, E), jnp.float32),
        grid_spec=pltpu.PrefetchScalarGridSpec(
            num_scalar_prefetch=0,
            grid=grid,
            in_specs=[
                per_batch,                 # x
                const((S, E)),             # pe
                per_layer((E, 3 * E)),     # wqkv (fused, Q pre-scaled)
                per_layer((E, E)),         # wo
                per_layer((E, nhid)),      # w1
                per_layer((1, nhid)),      # b1
                per_layer((nhid, E)),      # w2
                per_layer((9, E)),         # packed biases + LN params
                const((E, E)),             # dec_w
                const((1, E)),             # dec_b
            ],
            out_specs=per_batch,
            scratch_shapes=[pltpu.VMEM((B_blk, S, E), jnp.float32)],
        ),
        compiler_params=pltpu.CompilerParams(
            dimension_semantics=("parallel", "arbitrary"),
            vmem_limit_bytes=48 * 1024 * 1024),
    )(x, pe, wqkv, wo, w1, b1, w2, vec, dec_w, dec_b)

    return jnp.transpose(out, (1, 0, 2))                  # back to (S, N, E)


if __name__ == "__main__":
    # Small shapes consistent with TransformerModel(n_chars, nhead, nhid, nlayers)
    S, N = 8, 2               # seq_len, batch
    n_chars = 32              # d_model / vocab size
    nhead, nhid, nlayers = 4, 64, 2

    key = jax.random.PRNGKey(0)
    k_src, k_par = jax.random.split(key)
    src = jax.random.normal(k_src, (S, N, n_chars), dtype=jnp.float32)
    params = init_params(k_par, n_chars, nhead, nhid, nlayers)

    fwd = jax.jit(functools.partial(transformer_forward, nhead=nhead))
    out = jax.block_until_ready(fwd(src, params))

    assert out.shape == (S, N, n_chars), out.shape
    # log_softmax sanity: probabilities along the last dim sum to ~1
    probs_sum = jnp.sum(jnp.exp(out), axis=-1)
    assert bool(jnp.all(jnp.abs(probs_sum - 1.0) < 1e-3)), probs_sum

    print("KERNEL_OK")
</pallas_src>

<mosaic_0001>
module attributes {stable_mosaic.version = 11 : i64} {
  func.func @_fused_transformer_kernel(%arg0: i32, %arg1: i32, %arg2: memref<2x8x32xf32, #tpu.memory_space<vmem>>, %arg3: memref<8x32xf32, #tpu.memory_space<vmem>>, %arg4: memref<1x32x96xbf16, #tpu.memory_space<vmem>>, %arg5: memref<1x32x32xbf16, #tpu.memory_space<vmem>>, %arg6: memref<1x32x64xbf16, #tpu.memory_space<vmem>>, %arg7: memref<1x1x64xf32, #tpu.memory_space<vmem>>, %arg8: memref<1x64x32xbf16, #tpu.memory_space<vmem>>, %arg9: memref<1x9x32xf32, #tpu.memory_space<vmem>>, %arg10: memref<32x32xbf16, #tpu.memory_space<vmem>>, %arg11: memref<1x32xf32, #tpu.memory_space<vmem>>, %arg12: memref<2x8x32xf32, #tpu.memory_space<vmem>>, %arg13: memref<2x8x32xf32, #tpu.memory_space<vmem>>) attributes {dimension_semantics = [#tpu.dimension_semantics<parallel>, #tpu.dimension_semantics<arbitrary>], iteration_bounds = array<i64: 1, 2>, scalar_prefetch = 0 : i64, scratch_operands = 1 : i64, tpu.core_type = #tpu.core_type<tc>, window_params = [{transform_indices = @transform_0, window_bounds = array<i64: 2, 8, 32>}, {pipeline_mode = #tpu.pipeline_mode<synchronous>, transform_indices = @transform_1, window_bounds = array<i64: 8, 32>}, {transform_indices = @transform_2, window_bounds = array<i64: 1, 32, 96>}, {transform_indices = @transform_3, window_bounds = array<i64: 1, 32, 32>}, {transform_indices = @transform_4, window_bounds = array<i64: 1, 32, 64>}, {transform_indices = @transform_5, window_bounds = array<i64: 1, 1, 64>}, {transform_indices = @transform_6, window_bounds = array<i64: 1, 64, 32>}, {transform_indices = @transform_7, window_bounds = array<i64: 1, 9, 32>}, {pipeline_mode = #tpu.pipeline_mode<synchronous>, transform_indices = @transform_8, window_bounds = array<i64: 32, 32>}, {pipeline_mode = #tpu.pipeline_mode<synchronous>, transform_indices = @transform_9, window_bounds = array<i64: 1, 32>}, {transform_indices = @transform_10, window_bounds = array<i64: 2, 8, 32>}]} {
    %c0_i32 = arith.constant 0 : i32
    %0 = arith.cmpi eq, %arg1, %c0_i32 : i32
    %1 = arith.extui %0 : i1 to i32
    %c0_i32_0 = arith.constant 0 : i32
    %2 = arith.cmpi ne, %1, %c0_i32_0 : i32
    scf.if %2 {
      %c0_44 = arith.constant 0 : index
      %c0_45 = arith.constant 0 : index
      %c0_46 = arith.constant 0 : index
      %137 = vector.load %arg2[%c0_44, %c0_45, %c0_46] : memref<2x8x32xf32, #tpu.memory_space<vmem>>, vector<2x8x32xf32>
      %c0_47 = arith.constant 0 : index
      %c0_48 = arith.constant 0 : index
      %138 = vector.load %arg3[%c0_47, %c0_48] : memref<8x32xf32, #tpu.memory_space<vmem>>, vector<8x32xf32>
      %139 = vector.shape_cast %138 : vector<8x32xf32> to vector<1x8x32xf32>
      %140 = vector.broadcast %139 : vector<1x8x32xf32> to vector<2x8x32xf32>
      %141 = arith.addf %137, %140 : vector<2x8x32xf32>
      %c0_49 = arith.constant 0 : index
      %c0_50 = arith.constant 0 : index
      %c0_51 = arith.constant 0 : index
      %142 = vector.load %arg13[%c0_49, %c0_50, %c0_51] : memref<2x8x32xf32, #tpu.memory_space<vmem>>, vector<2x8x32xf32>
      tpu.vector_store %arg13[%c0_49, %c0_50, %c0_51], %141 {strides = array<i32>} : memref<2x8x32xf32, #tpu.memory_space<vmem>>, vector<2x8x32xf32>,
    } else {
    }
    %c0 = arith.constant 0 : index
    %c0_1 = arith.constant 0 : index
    %c0_2 = arith.constant 0 : index
    %3 = vector.load %arg13[%c0, %c0_1, %c0_2] : memref<2x8x32xf32, #tpu.memory_space<vmem>>, vector<2x8x32xf32>
    %4 = vector.shape_cast %3 : vector<2x8x32xf32> to vector<16x32xf32>
    %5 = arith.truncf %4 : vector<16x32xf32> to vector<16x32xbf16>
    %c0_3 = arith.constant 0 : index
    %c0_4 = arith.constant 0 : index
    %c0_5 = arith.constant 0 : index
    %6 = vector.load %arg9[%c0_3, %c0_4, %c0_5] : memref<1x9x32xf32, #tpu.memory_space<vmem>>, vector<1x9x32xf32>
    %7 = vector.shape_cast %6 : vector<1x9x32xf32> to vector<9x32xf32>
    %8 = vector.extract_strided_slice %7 {offsets = [0, 0], sizes = [1, 32], strides = [1, 1]} : vector<9x32xf32> to vector<1x32xf32>
    %9 = vector.extract_strided_slice %7 {offsets = [1, 0], sizes = [1, 32], strides = [1, 1]} : vector<9x32xf32> to vector<1x32xf32>
    %10 = vector.extract_strided_slice %7 {offsets = [2, 0], sizes = [1, 32], strides = [1, 1]} : vector<9x32xf32> to vector<1x32xf32>
    %11 = vector.extract_strided_slice %7 {offsets = [3, 0], sizes = [1, 32], strides = [1, 1]} : vector<9x32xf32> to vector<1x32xf32>
    %12 = vector.extract_strided_slice %7 {offsets = [4, 0], sizes = [1, 32], strides = [1, 1]} : vector<9x32xf32> to vector<1x32xf32>
    %13 = vector.extract_strided_slice %7 {offsets = [5, 0], sizes = [1, 32], strides = [1, 1]} : vector<9x32xf32> to vector<1x32xf32>
    %14 = vector.extract_strided_slice %7 {offsets = [6, 0], sizes = [1, 32], strides = [1, 1]} : vector<9x32xf32> to vector<1x32xf32>
    %15 = vector.extract_strided_slice %7 {offsets = [7, 0], sizes = [1, 32], strides = [1, 1]} : vector<9x32xf32> to vector<1x32xf32>
    %16 = vector.extract_strided_slice %7 {offsets = [8, 0], sizes = [1, 32], strides = [1, 1]} : vector<9x32xf32> to vector<1x32xf32>
    %c0_6 = arith.constant 0 : index
    %c0_7 = arith.constant 0 : index
    %c0_8 = arith.constant 0 : index
    %17 = vector.load %arg4[%c0_6, %c0_7, %c0_8] : memref<1x32x96xbf16, #tpu.memory_space<vmem>>, vector<1x32x96xbf16>
    %18 = vector.shape_cast %17 : vector<1x32x96xbf16> to vector<32x96xbf16>
    %cst = arith.constant dense<0.000000e+00> : vector<16x96xf32>
    %19 = tpu.matmul %5, %18, %cst {dimension_numbers = #tpu.dot_dimension_numbers<[1], [0], [0], [1], [0, 0, 1, 1], [], []>} : vector<16x32xbf16>, vector<32x96xbf16>, vector<16x96xf32> -> vector<16x96xf32>
    %20 = vector.extract_strided_slice %19 {offsets = [0, 0], sizes = [16, 32], strides = [1, 1]} : vector<16x96xf32> to vector<16x32xf32>
    %21 = vector.broadcast %8 : vector<1x32xf32> to vector<16x32xf32>
    %22 = arith.addf %20, %21 : vector<16x32xf32>
    %23 = arith.truncf %22 : vector<16x32xf32> to vector<16x32xbf16>
    %24 = vector.extract_strided_slice %19 {offsets = [0, 32], sizes = [16, 32], strides = [1, 1]} : vector<16x96xf32> to vector<16x32xf32>
    %25 = vector.broadcast %9 : vector<1x32xf32> to vector<16x32xf32>
    %26 = arith.addf %24, %25 : vector<16x32xf32>
    %27 = arith.truncf %26 : vector<16x32xf32> to vector<16x32xbf16>
    %28 = vector.extract_strided_slice %19 {offsets = [0, 64], sizes = [16, 32], strides = [1, 1]} : vector<16x96xf32> to vector<16x32xf32>
    %29 = vector.broadcast %10 : vector<1x32xf32> to vector<16x32xf32>
    %30 = arith.addf %28, %29 : vector<16x32xf32>
    %31 = arith.truncf %30 : vector<16x32xf32> to vector<16x32xbf16>
    %32 = vector.shape_cast %23 : vector<16x32xbf16> to vector<2x8x4x8xbf16>
    %33 = tpu.transpose %32, [0, 2, 1, 3] : vector<2x8x4x8xbf16> -> vector<2x4x8x8xbf16>
    %34 = vector.shape_cast %33 : vector<2x4x8x8xbf16> to vector<8x8x8xbf16>
    %35 = vector.shape_cast %27 : vector<16x32xbf16> to vector<2x8x4x8xbf16>
    %36 = tpu.transpose %35, [0, 2, 1, 3] : vector<2x8x4x8xbf16> -> vector<2x4x8x8xbf16>
    %37 = vector.shape_cast %36 : vector<2x4x8x8xbf16> to vector<8x8x8xbf16>
    %38 = vector.shape_cast %31 : vector<16x32xbf16> to vector<2x8x4x8xbf16>
    %39 = tpu.transpose %38, [0, 2, 1, 3] : vector<2x8x4x8xbf16> -> vector<2x4x8x8xbf16>
    %40 = vector.shape_cast %39 : vector<2x4x8x8xbf16> to vector<8x8x8xbf16>
    %cst_9 = arith.constant dense<0.000000e+00> : vector<8x8x8xf32>
    %41 = tpu.matmul %34, %37, %cst_9 {dimension_numbers = #tpu.dot_dimension_numbers<[2], [2], [1], [1], [0, 0, 0, 1, 1, 1], [0], [0]>} : vector<8x8x8xbf16>, vector<8x8x8xbf16>, vector<8x8x8xf32> -> vector<8x8x8xf32>
    %42 = tpu.iota {dimensions = array<i32: 0>} : vector<8x8xi32>
    %43 = tpu.iota {dimensions = array<i32: 1>} : vector<8x8xi32>
    %44 = arith.cmpi sle, %43, %42 : vector<8x8xi32>
    %45 = vector.shape_cast %44 : vector<8x8xi1> to vector<1x8x8xi1>
    %cst_10 = arith.constant -1.000000e+30 : f32
    %46 = vector.shape_cast %45 : vector<1x8x8xi1> to vector<1x8x8xi1>
    %47 = vector.broadcast %46 : vector<1x8x8xi1> to vector<8x8x8xi1>
    %48 = vector.broadcast %cst_10 : f32 to vector<8x8x8xf32>
    %49 = arith.select %47, %41, %48 : vector<8x8x8xi1>, vector<8x8x8xf32>
    %cst_11 = arith.constant dense<0xFF800000> : vector<8x8xf32>
    %50 = vector.multi_reduction <maximumf>, %49, %cst_11 [2] : vector<8x8x8xf32> to vector<8x8xf32>
    %51 = vector.shape_cast %50 : vector<8x8xf32> to vector<8x8x1xf32>
    %52 = vector.broadcast %51 : vector<8x8x1xf32> to vector<8x8x8xf32>
    %53 = arith.subf %49, %52 : vector<8x8x8xf32>
    %54 = math.exp %53 : vector<8x8x8xf32>
    %cst_12 = arith.constant dense<0.000000e+00> : vector<8x8xf32>
    %55 = vector.multi_reduction <add>, %54, %cst_12 [2] : vector<8x8x8xf32> to vector<8x8xf32>
    %56 = vector.shape_cast %55 : vector<8x8xf32> to vector<8x8x1xf32>
    %57 = vector.broadcast %56 : vector<8x8x1xf32> to vector<8x8x8xf32>
    %58 = arith.divf %54, %57 : vector<8x8x8xf32>
    %59 = arith.truncf %58 : vector<8x8x8xf32> to vector<8x8x8xbf16>
    %cst_13 = arith.constant dense<0.000000e+00> : vector<8x8x8xf32>
    %60 = tpu.matmul %59, %40, %cst_13 {dimension_numbers = #tpu.dot_dimension_numbers<[2], [1], [1], [2], [0, 0, 0, 1, 1, 2], [0], [0]>} : vector<8x8x8xbf16>, vector<8x8x8xbf16>, vector<8x8x8xf32> -> vector<8x8x8xf32>
    %61 = vector.shape_cast %60 : vector<8x8x8xf32> to vector<2x4x8x8xf32>
    %62 = tpu.transpose %61, [0, 2, 1, 3] : vector<2x4x8x8xf32> -> vector<2x8x4x8xf32>
    %63 = vector.shape_cast %62 : vector<2x8x4x8xf32> to vector<16x32xf32>
    %c0_14 = arith.constant 0 : index
    %c0_15 = arith.constant 0 : index
    %c0_16 = arith.constant 0 : index
    %64 = vector.load %arg5[%c0_14, %c0_15, %c0_16] : memref<1x32x32xbf16, #tpu.memory_space<vmem>>, vector<1x32x32xbf16>
    %65 = vector.shape_cast %64 : vector<1x32x32xbf16> to vector<32x32xbf16>
    %66 = arith.truncf %63 : vector<16x32xf32> to vector<16x32xbf16>
    %cst_17 = arith.constant dense<0.000000e+00> : vector<16x32xf32>
    %67 = tpu.matmul %66, %65, %cst_17 {dimension_numbers = #tpu.dot_dimension_numbers<[1], [0], [0], [1], [0, 0, 1, 1], [], []>} : vector<16x32xbf16>, vector<32x32xbf16>, vector<16x32xf32> -> vector<16x32xf32>
    %68 = vector.broadcast %11 : vector<1x32xf32> to vector<16x32xf32>
    %69 = arith.addf %67, %68 : vector<16x32xf32>
    %70 = arith.addf %4, %69 : vector<16x32xf32>
    %cst_18 = arith.constant dense<0.000000e+00> : vector<16xf32>
    %71 = vector.multi_reduction <add>, %70, %cst_18 [1] : vector<16x32xf32> to vector<16xf32>
    %72 = vector.shape_cast %71 : vector<16xf32> to vector<16x1xf32>
    %cst_19 = arith.constant 3.200000e+01 : f32
    %73 = vector.broadcast %cst_19 : f32 to vector<16x1xf32>
    %74 = arith.divf %72, %73 : vector<16x1xf32>
    %75 = vector.broadcast %74 : vector<16x1xf32> to vector<16x32xf32>
    %76 = arith.subf %70, %75 : vector<16x32xf32>
    %77 = arith.mulf %76, %76 : vector<16x32xf32>
    %cst_20 = arith.constant dense<0.000000e+00> : vector<16xf32>
    %78 = vector.multi_reduction <add>, %77, %cst_20 [1] : vector<16x32xf32> to vector<16xf32>
    %79 = vector.shape_cast %78 : vector<16xf32> to vector<16x1xf32>
    %cst_21 = arith.constant 3.200000e+01 : f32
    %80 = vector.broadcast %cst_21 : f32 to vector<16x1xf32>
    %81 = arith.divf %79, %80 : vector<16x1xf32>
    %82 = vector.broadcast %74 : vector<16x1xf32> to vector<16x32xf32>
    %83 = arith.subf %70, %82 : vector<16x32xf32>
    %cst_22 = arith.constant 9.99999974E-6 : f32
    %84 = vector.broadcast %cst_22 : f32 to vector<16x1xf32>
    %85 = arith.addf %81, %84 : vector<16x1xf32>
    %86 = math.rsqrt %85 : vector<16x1xf32>
    %87 = vector.broadcast %86 : vector<16x1xf32> to vector<16x32xf32>
    %88 = arith.mulf %83, %87 : vector<16x32xf32>
    %89 = vector.broadcast %12 : vector<1x32xf32> to vector<16x32xf32>
    %90 = arith.mulf %88, %89 : vector<16x32xf32>
    %91 = vector.broadcast %13 : vector<1x32xf32> to vector<16x32xf32>
    %92 = arith.addf %90, %91 : vector<16x32xf32>
    %c0_23 = arith.constant 0 : index
    %c0_24 = arith.constant 0 : index
    %c0_25 = arith.constant 0 : index
    %93 = vector.load %arg6[%c0_23, %c0_24, %c0_25] : memref<1x32x64xbf16, #tpu.memory_space<vmem>>, vector<1x32x64xbf16>
    %94 = vector.shape_cast %93 : vector<1x32x64xbf16> to vector<32x64xbf16>
    %95 = arith.truncf %92 : vector<16x32xf32> to vector<16x32xbf16>
    %cst_26 = arith.constant dense<0.000000e+00> : vector<16x64xf32>
    %96 = tpu.matmul %95, %94, %cst_26 {dimension_numbers = #tpu.dot_dimension_numbers<[1], [0], [0], [1], [0, 0, 1, 1], [], []>} : vector<16x32xbf16>, vector<32x64xbf16>, vector<16x64xf32> -> vector<16x64xf32>
    %c0_27 = arith.constant 0 : index
    %c0_28 = arith.constant 0 : index
    %c0_29 = arith.constant 0 : index
    %97 = vector.load %arg7[%c0_27, %c0_28, %c0_29] : memref<1x1x64xf32, #tpu.memory_space<vmem>>, vector<1x1x64xf32>
    %98 = vector.shape_cast %97 : vector<1x1x64xf32> to vector<1x64xf32>
    %99 = vector.broadcast %98 : vector<1x64xf32> to vector<16x64xf32>
    %100 = arith.addf %96, %99 : vector<16x64xf32>
    %cst_30 = arith.constant 0.000000e+00 : f32
    %101 = vector.broadcast %cst_30 : f32 to vector<16x64xf32>
    %102 = arith.maximumf %100, %101 : vector<16x64xf32>
    %c0_31 = arith.constant 0 : index
    %c0_32 = arith.constant 0 : index
    %c0_33 = arith.constant 0 : index
    %103 = vector.load %arg8[%c0_31, %c0_32, %c0_33] : memref<1x64x32xbf16, #tpu.memory_space<vmem>>, vector<1x64x32xbf16>
    %104 = vector.shape_cast %103 : vector<1x64x32xbf16> to vector<64x32xbf16>
    %105 = arith.truncf %102 : vector<16x64xf32> to vector<16x64xbf16>
    %cst_34 = arith.constant dense<0.000000e+00> : vector<16x32xf32>
    %106 = tpu.matmul %105, %104, %cst_34 {dimension_numbers = #tpu.dot_dimension_numbers<[1], [0], [0], [1], [0, 0, 1, 1], [], []>} : vector<16x64xbf16>, vector<64x32xbf16>, vector<16x32xf32> -> vector<16x32xf32>
    %107 = vector.broadcast %14 : vector<1x32xf32> to vector<16x32xf32>
    %108 = arith.addf %106, %107 : vector<16x32xf32>
    %109 = arith.addf %92, %108 : vector<16x32xf32>
    %cst_35 = arith.constant dense<0.000000e+00> : vector<16xf32>
    %110 = vector.multi_reduction <add>, %109, %cst_35 [1] : vector<16x32xf32> to vector<16xf32>
    %111 = vector.shape_cast %110 : vector<16xf32> to vector<16x1xf32>
    %cst_36 = arith.constant 3.200000e+01 : f32
    %112 = vector.broadcast %cst_36 : f32 to vector<16x1xf32>
    %113 = arith.divf %111, %112 : vector<16x1xf32>
    %114 = vector.broadcast %113 : vector<16x1xf32> to vector<16x32xf32>
    %115 = arith.subf %109, %114 : vector<16x32xf32>
    %116 = arith.mulf %115, %115 : vector<16x32xf32>
    %cst_37 = arith.constant dense<0.000000e+00> : vector<16xf32>
    %117 = vector.multi_reduction <add>, %116, %cst_37 [1] : vector<16x32xf32> to vector<16xf32>
    %118 = vector.shape_cast %117 : vector<16xf32> to vector<16x1xf32>
    %cst_38 = arith.constant 3.200000e+01 : f32
    %119 = vector.broadcast %cst_38 : f32 to vector<16x1xf32>
    %120 = arith.divf %118, %119 : vector<16x1xf32>
    %121 = vector.broadcast %113 : vector<16x1xf32> to vector<16x32xf32>
    %122 = arith.subf %109, %121 : vector<16x32xf32>
    %cst_39 = arith.constant 9.99999974E-6 : f32
    %123 = vector.broadcast %cst_39 : f32 to vector<16x1xf32>
    %124 = arith.addf %120, %123 : vector<16x1xf32>
    %125 = math.rsqrt %124 : vector<16x1xf32>
    %126 = vector.broadcast %125 : vector<16x1xf32> to vector<16x32xf32>
    %127 = arith.mulf %122, %126 : vector<16x32xf32>
    %128 = vector.broadcast %15 : vector<1x32xf32> to vector<16x32xf32>
    %129 = arith.mulf %127, %128 : vector<16x32xf32>
    %130 = vector.broadcast %16 : vector<1x32xf32> to vector<16x32xf32>
    %131 = arith.addf %129, %130 : vector<16x32xf32>
    %132 = vector.shape_cast %131 : vector<16x32xf32> to vector<2x8x32xf32>
    %c0_40 = arith.constant 0 : index
    %c0_41 = arith.constant 0 : index
    %c0_42 = arith.constant 0 : index
    %133 = vector.load %arg13[%c0_40, %c0_41, %c0_42] : memref<2x8x32xf32, #tpu.memory_space<vmem>>, vector<2x8x32xf32>
    tpu.vector_store %arg13[%c0_40, %c0_41, %c0_42], %132 {strides = array<i32>} : memref<2x8x32xf32, #tpu.memory_space<vmem>>, vector<2x8x32xf32>,
    %c1_i32 = arith.constant 1 : i32
    %134 = arith.cmpi eq, %arg1, %c1_i32 : i32
    %135 = arith.extui %134 : i1 to i32
    %c0_i32_43 = arith.constant 0 : i32
    %136 = arith.cmpi ne, %135, %c0_i32_43 : i32
    scf.if %136 {
      %c0_44 = arith.constant 0 : index
      %c0_45 = arith.constant 0 : index
      %137 = vector.load %arg10[%c0_44, %c0_45] : memref<32x32xbf16, #tpu.memory_space<vmem>>, vector<32x32xbf16>
      %138 = arith.truncf %131 : vector<16x32xf32> to vector<16x32xbf16>
      %cst_46 = arith.constant dense<0.000000e+00> : vector<16x32xf32>
      %139 = tpu.matmul %138, %137, %cst_46 {dimension_numbers = #tpu.dot_dimension_numbers<[1], [0], [0], [1], [0, 0, 1, 1], [], []>} : vector<16x32xbf16>, vector<32x32xbf16>, vector<16x32xf32> -> vector<16x32xf32>
      %c0_47 = arith.constant 0 : index
      %c0_48 = arith.constant 0 : index
      %140 = vector.load %arg11[%c0_47, %c0_48] : memref<1x32xf32, #tpu.memory_space<vmem>>, vector<1x32xf32>
      %141 = vector.broadcast %140 : vector<1x32xf32> to vector<16x32xf32>
      %142 = arith.addf %139, %141 : vector<16x32xf32>
      %cst_49 = arith.constant dense<0xFF800000> : vector<16xf32>
      %143 = vector.multi_reduction <maximumf>, %142, %cst_49 [1] : vector<16x32xf32> to vector<16xf32>
      %144 = vector.shape_cast %143 : vector<16xf32> to vector<16x1xf32>
      %145 = vector.broadcast %144 : vector<16x1xf32> to vector<16x32xf32>
      %146 = arith.subf %142, %145 : vector<16x32xf32>
      %147 = math.exp %146 : vector<16x32xf32>
      %cst_50 = arith.constant dense<0.000000e+00> : vector<16xf32>
      %148 = vector.multi_reduction <add>, %147, %cst_50 [1] : vector<16x32xf32> to vector<16xf32>
      %149 = vector.shape_cast %148 : vector<16xf32> to vector<16x1xf32>
      %150 = math.log %149 : vector<16x1xf32>
      %151 = arith.addf %144, %150 : vector<16x1xf32>
      %152 = vector.broadcast %151 : vector<16x1xf32> to vector<16x32xf32>
      %153 = arith.subf %142, %152 : vector<16x32xf32>
      %154 = vector.shape_cast %153 : vector<16x32xf32> to vector<2x8x32xf32>
      %c0_51 = arith.constant 0 : index
      %c0_52 = arith.constant 0 : index
      %c0_53 = arith.constant 0 : index
      %155 = vector.load %arg12[%c0_51, %c0_52, %c0_53] : memref<2x8x32xf32, #tpu.memory_space<vmem>>, vector<2x8x32xf32>
      tpu.vector_store %arg12[%c0_51, %c0_52, %c0_53], %154 {strides = array<i32>} : memref<2x8x32xf32, #tpu.memory_space<vmem>>, vector<2x8x32xf32>,
    } else {
    }
    return
  }
  func.func @transform_0(%arg0: i32, %arg1: i32) -> (i32, i32, i32) {
    %c0_i32 = arith.constant 0 : i32
    %c0_i32_0 = arith.constant 0 : i32
    %c0_i32_1 = arith.constant 0 : i32
    return %arg0, %c0_i32, %c0_i32_0 : i32, i32, i32
  }
  func.func @transform_1(%arg0: i32, %arg1: i32) -> (i32, i32) {
    %c0_i32 = arith.constant 0 : i32
    %c0_i32_0 = arith.constant 0 : i32
    %c0_i32_1 = arith.constant 0 : i32
    return %c0_i32, %c0_i32_0 : i32, i32
  }
  func.func @transform_2(%arg0: i32, %arg1: i32) -> (i32, i32, i32) {
    %c0_i32 = arith.constant 0 : i32
    %c0_i32_0 = arith.constant 0 : i32
    %c0_i32_1 = arith.constant 0 : i32
    return %arg1, %c0_i32, %c0_i32_0 : i32, i32, i32
  }
  func.func @transform_3(%arg0: i32, %arg1: i32) -> (i32, i32, i32) {
    %c0_i32 = arith.constant 0 : i32
    %c0_i32_0 = arith.constant 0 : i32
    %c0_i32_1 = arith.constant 0 : i32
    return %arg1, %c0_i32, %c0_i32_0 : i32, i32, i32
  }
  func.func @transform_4(%arg0: i32, %arg1: i32) -> (i32, i32, i32) {
    %c0_i32 = arith.constant 0 : i32
    %c0_i32_0 = arith.constant 0 : i32
    %c0_i32_1 = arith.constant 0 : i32
    return %arg1, %c0_i32, %c0_i32_0 : i32, i32, i32
  }
  func.func @transform_5(%arg0: i32, %arg1: i32) -> (i32, i32, i32) {
    %c0_i32 = arith.constant 0 : i32
    %c0_i32_0 = arith.constant 0 : i32
    %c0_i32_1 = arith.constant 0 : i32
    return %arg1, %c0_i32, %c0_i32_0 : i32, i32, i32
  }
  func.func @transform_6(%arg0: i32, %arg1: i32) -> (i32, i32, i32) {
    %c0_i32 = arith.constant 0 : i32
    %c0_i32_0 = arith.constant 0 : i32
    %c0_i32_1 = arith.constant 0 : i32
    return %arg1, %c0_i32, %c0_i32_0 : i32, i32, i32
  }
  func.func @transform_7(%arg0: i32, %arg1: i32) -> (i32, i32, i32) {
    %c0_i32 = arith.constant 0 : i32
    %c0_i32_0 = arith.constant 0 : i32
    %c0_i32_1 = arith.constant 0 : i32
    return %arg1, %c0_i32, %c0_i32_0 : i32, i32, i32
  }
  func.func @transform_8(%arg0: i32, %arg1: i32) -> (i32, i32) {
    %c0_i32 = arith.constant 0 : i32
    %c0_i32_0 = arith.constant 0 : i32
    %c0_i32_1 = arith.constant 0 : i32
    return %c0_i32, %c0_i32_0 : i32, i32
  }
  func.func @transform_9(%arg0: i32, %arg1: i32) -> (i32, i32) {
    %c0_i32 = arith.constant 0 : i32
    %c0_i32_0 = arith.constant 0 : i32
    %c0_i32_1 = arith.constant 0 : i32
    return %c0_i32, %c0_i32_0 : i32, i32
  }
  func.func @transform_10(%arg0: i32, %arg1: i32) -> (i32, i32, i32) {
    %c0_i32 = arith.constant 0 : i32
    %c0_i32_0 = arith.constant 0 : i32
    %c0_i32_1 = arith.constant 0 : i32
    return %arg0, %c0_i32, %c0_i32_0 : i32, i32, i32
  }
}

</mosaic_0001>

<bundles_post_ra>
// kernel: transformer_forward.1
= control target key start
LH: loop header
LB: loop body
LE: loop exit
PB: predicated region body
PF: predicated region fallthrough
CT: control target
= control target key end

     0   :  { %s3623_s13 = smov 0   ;;  %s3625_s14 = smov 0   ;;  %s4162_s0 = inlined_call_operand.vmem [shape: f32[2,8,32], index: 0, kind: input, shape index: {}]   ;;  %s4163_s1 = inlined_call_operand.vmem [shape: f32[8,32], index: 1, kind: input, shape index: {}]   ;;  %s4164_s2 = inlined_call_operand.vmem [shape: bf16[2,32,96], index: 2, kind: input, shape index: {}]   ;;  %s4165_s3 = inlined_call_operand.vmem [shape: bf16[2,32,32], index: 3, kind: input, shape index: {}]   ;;  %s4166_s4 = inlined_call_operand.vmem [shape: bf16[2,32,64], index: 4, kind: input, shape index: {}]   ;;  %s4167_s5 = inlined_call_operand.vmem [shape: f32[2,1,64], index: 5, kind: input, shape index: {}]   ;;  %s4168_s6 = inlined_call_operand.vmem [shape: bf16[2,64,32], index: 6, kind: input, shape index: {}]   ;;  %s4169_s7 = inlined_call_operand.vmem [shape: f32[2,9,32], index: 7, kind: input, shape index: {}]   ;;  %s4170_s8 = inlined_call_operand.vmem [shape: bf16[32,32], index: 8, kind: input, shape index: {}]   ;;  %s4171_s9 = inlined_call_operand.vmem [shape: f32[1,32], index: 9, kind: input, shape index: {}]   ;;  %s4172_s10 = inlined_call_operand.vmem [shape: f32[2,8,32], index: 10, kind: output, shape index: {}]  }
   0x1   :  { %s3627_s15 = smov 0  }
   0x2 LB: > { %s29_s16 = sadd.s32 1, %s3546_s14  ;;  %p3147_p0 = scmp.ge.s32.totalorder %s3550_s15, 1  ;;  %s3550_s15 = sphi %s3627_s15, %s20_s15   ;;  %s3546_s14 = sphi %s3625_s14, %s4179_s14   ;;  %s3542_s13 = sphi %s3623_s13, %s4178_s13  }
   0x3   : > { %p30_p1 = scmp.ge.s32.totalorder %s29_s16, 2  ;;  %p383_p2 = scmp.lt.s32.totalorder %s3550_s15, 3 }
   0x5   : > { %s4181_s16 = smov (%p30_p1, %s29_s16), 0  ;;  %p384_p3 = pnand %p3147_p0, %p383_p2 }
   0x6   : > { %4173 = sst [smem:[#allocation3_spill]] %s4181_s16  ;;  %p455_p4 = scmp.lt.s32.totalorder (!%p384_p3), %s3542_s13, 1 }
   0x7   : > { %387 = sbr.rel (%p384_p3) target bundleno = 3298 (0xce2), region = 60  ;;  %p3158_p5 = scmp.ne.s32.totalorder (!%p384_p3), %s3542_s13, 0 }
   0xe   : > { %s3645_s17 = scalar_select %p455_p4, %s3542_s13, 1 }
   0xf   : > { %493 = sbr.rel (%p3158_p5) target bundleno = 22 (0x16), region = 64  ;;  %v494_v0 = vld [vmem:[%s4162_s0] sm:$0xff] (!%p3158_p5)  ;;  %vm499_vm0 = vcmask (!%p3158_p5), 261120   ;;  %v495_v2 = vld [vmem:[%s4162_s0 + $0x8] sm:$0xff] (!%p3158_p5) }
  0x10   : > { %s3216_s18 = sshll.u32 %s3645_s17, 4  ;;  %s3219_s11 = sshll.u32 %s3645_s17, 5  ;;  %v496_v1 = vld [vmem:[%s4163_s1] sm:$0xff] (!%p3158_p5) }
  0x11   : > { %s459_s24 = scalar_lea.vmem %s4164_s2, %s3216_s18  ;;  %s3658_s27 = scalar_lea.vmem %s4165_s3, %s3216_s18  ;;  %v497_v3 = vadd.f32 (!%p3158_p5), %v496_v1, %v494_v0  ;;  %v498_v4 = vadd.f32 (!%p3158_p5), %v496_v1, %v495_v2 }
  0x12   : > { %s3663_s30 = scalar_lea.vmem %s4166_s4, %s3216_s18  ;;  %s3669_s19 = scalar_lea.vmem %s4168_s6, %s3219_s11 }
  0x13   : > { %s3674_s22 = scalar_lea.vmem %s4169_s7, %s3216_s18  ;;  %500 = vst.msk [vmem:[#allocation2] sm:$0xff] (!%p3158_p5), %vm499_vm0, %v497_v3  ;;  %501 = vst.msk [vmem:[#allocation2 + $0x8] sm:$0xff] (!%p3158_p5), %vm499_vm0, %v498_v4 }
  0x16 PF: > { %v3465_v5 = vld [vmem:[%s459_s24] sm:$0xff]   ;;  %v568_v6 = vlaneseq  ;;  %v3552_v7 = vmov 0.0   ;;  %v3466_v8 = vld [vmem:[%s459_s24 + $0x8] sm:$0xff]   ;;  %vm3553_vm1 = vmmov 0   ;;  %vm523_vm2 = vcmask 261120   ;;  %s3554_s18 = smov 32   ;;  %s4176_s28 = scalar_lea.vmem %s4167_s5, %s3645_s17 }
  0x17   : > { %3270 = vmatprep.subr.bf16.mxu0 %v3552_v7  ;;  %3278 = vmatprep.subr.bf16.mxu1 %v3552_v7  ;;  %v505_v12 = vld [vmem:[%s3674_s22] sm:$0xff]  ;;  %s3555_s21 = smov 112   ;;  %s3556_s24 = smov 120   ;;  %v3560_v34 = vmov 1983009808   ;;  %v3562_v54 = vmov 0  }
  0x18   : > { %3271 = vmatpush3.bf16.msra.mxu0 %v3465_v5  ;;  %3274 = vmatprep.mubr.msk.bf16.mxu0 %vm3553_vm1, %v3552_v7  ;;  %v3691_v11 = vshrl.u32 %v568_v6, 7  ;;  %s3557_s11 = smov 104   ;;  %s3558_s12 = smov 96   ;;  %v628_v35 = vunpack.c.l.s4 %v3560_v34  ;;  %v3561_v40 = vmov 1934713408   ;;  %v3731_v55 = vpack.i.b16 %v3562_v54, %v3562_v54 }
  0x19   : > { %3272 = vmatprep.subr.bf16.mxu0 %v3552_v7  ;;  %3280 = vmatprep.mubr.msk.bf16.mxu1 %vm3553_vm1, %v3552_v7  ;;  %s3559_s20 = smov 64   ;;  %v659_v41 = vunpack.c.l.s4 %v3561_v40  ;;  %vm1456_vm3 = vcmask 64512   ;;  %vm1939_vm5 = vcmask 1043456   ;;  %s3563_s23 = smov 16   ;;  %vm2603_vm6 = vcmask 130048  }
  0x1a   : > { %v502_v9 = vld [vmem:[#allocation2] sm:$0xff]  ;;  %v503_v10 = vld [vmem:[#allocation2 + $0x8] sm:$0xff]  ;;  %v577_v13 = vsub.s32 1, %v3691_v11  ;;  %v570_v16 = vsub.s32 0, %v3691_v11  ;;  %v588_v32 = vsub.s32 2, %v3691_v11  ;;  %v629_v37 = vunpack.c.0.s8 %v628_v35  ;;  %s3564_s25 = smov 8  }
  0x1b   : > { %v504_v14 = vpack.c.bf16 %v503_v10, %v502_v9  ;;  %v660_v46 = vunpack.c.0.s8 %v659_v41  ;;  %s3565_s26 = smov 24   ;;  %vm2606_vm7 = vcmask 195584   ;;  %vm2822_vm8 = vcmask 523264   ;;  %p3207_p6 = scmp.ne.s32.totalorder %s3542_s13, 1 }
  0x1c   : > { %3273 = vmatpush3.bf16.msra.mxu0 %v3466_v8  ;;  %v578_v15 = vrot.slane %v505_v12, %v577_v13  ;;  %v571_v17 = vrot.slane %v505_v12, %v570_v16  ;;  %v589_v33 = vrot.slane %v505_v12, %v588_v32  ;;  %v3725_v42 = vsub.s32 %v629_v37, %v3691_v11 }
  0x1d   : > { %3284 = vmatprep.subr.bf16.mxu0 %v3552_v7  ;;  %v3734_v58 = vsub.s32 %v660_v46, %v3691_v11  ;;  %vm3567_vm9 = vmmov (!%p3207_p6), 0  }
  0x1e   : > { %580 = vrot.lane.b32.xlu0 %v578_v15, %s3554_s18 }
  0x1f   : > { %3275 = vmatmul.mubr.msk.bf16.vlgmr.msra.gmra.mrb[0].mxu0 %vm523_vm2, %v504_v14 }
  0x20   : > { %3286 = vmatprep.mubr.msk.bf16.mxu0 %vm3553_vm1, %v3552_v7 }
  0x90   : > { %v581_v18 = vpop.permute.xlu0 %580 }
  0xf2   : > { %v3703_v19 = vpop.f32.mrb[0].mxu0 }
  0xf3   : > { %v3276_v20 = vpop.f32.mrb[1].mxu0  ;;  %v572_v22 = vadd.f32 %v571_v17, %v3703_v19  ;;  %v583_v23 = vadd.f32 %v581_v18, %v3703_v19 }
  0xf4   : > { %v3705_v21 = vpop.f32.mrb[2].mxu0 }
  0xf5   : > { %v573_v24 = vadd.f32 %v571_v17, %v3705_v21  ;;  %v584_v25 = vadd.f32 %v581_v18, %v3705_v21  ;;  %v3277_v26 = vpop.f32.mrb[3].mxu0 }
  0xf7   : > { %v3711_v27 = vpack.c.bf16 %v573_v24, %v572_v22  ;;  %v585_v28 = vpack.c.bf16 %v584_v25, %v583_v23 }
  0xf9   : > { %885 = vrot.lane.b32.xlu1 %v585_v28, %s3555_s21  ;;  %883 = vrot.lane.b32.xlu0 %v585_v28, %s3556_s24  ;;  %v608_v13 = vshrl.u32 %v3711_v27, 16 }
  0xfd   : > { %887 = vrot.lane.b32.xlu1 %v585_v28, %s3557_s11  ;;  %889 = vrot.lane.b32.xlu0 %v585_v28, %s3558_s12 }
 0x16b   : > { %v886_v29 = vpop.permute.xlu1 %885  ;;  %v884_v30 = vpop.permute.xlu0 %883 }
 0x16c   : > { %893 = vrot.lane.b32.xlu0 %v886_v29, %s3558_s12  ;;  %891 = vrot.lane.b32.xlu1 %v884_v30, %s3558_s12 }
 0x16f   : > { %v888_v31 = vpop.permute.xlu1 %887  ;;  %v890_v36 = vpop.permute.xlu0 %889 }
 0x170   : > { %895 = vrot.lane.b32.xlu1 %v888_v31, %s3558_s12  ;;  %598 = vrot.lane.b32.xlu0 %v3711_v27, %s3556_s24  ;;  %v901_v48 = vshrl.u32 %v890_v36, 16 }
 0x174   : > { %600 = vrot.lane.b32.xlu1 %v3711_v27, %s3555_s21  ;;  %602 = vrot.lane.b32.xlu0 %v3711_v27, %s3557_s11 }
 0x178   : > { %591 = vrot.lane.b32.xlu1 %v589_v33, %s3559_s20 }
 0x1de   : > { %v892_v38 = vpop.permute.xlu1 %891  ;;  %v894_v39 = vpop.permute.xlu0 %893 }
 0x1df   : > { %v899_v43 = vpack.i.b16 %v892_v38, %v890_v36  ;;  %v902_v44 = vshrl.u32 %v892_v38, 16  ;;  %v909_v49 = vshrl.u32 %v894_v39, 16 }
 0x1e1   : > { %v920_v52 = vrot.slane %v899_v43, %v3725_v42  ;;  %v903_v56 = vpack.i.b16 %v902_v44, %v901_v48  ;;  %v913_v0 = vcombine.high %v899_v43, %v3731_v55 }
 0x1e2   : > { %v896_v45 = vpop.permute.xlu1 %895  ;;  %v599_v51 = vpop.permute.xlu0 %598 }
 0x1e3   : > { %v907_v47 = vpack.i.b16 %v896_v45, %v894_v39  ;;  %v910_v50 = vshrl.u32 %v896_v45, 16  ;;  %v979_v1 = vcombine.high %v903_v56, %v3731_v55  ;;  %v986_v2 = vrot.slane %v903_v56, %v3725_v42 }
 0x1e4   : > { %v609_v3 = vshrl.u32 %v599_v51, 16  ;;  %v3745_v10 = vpack.i.b16 %v599_v51, %v3711_v27  ;;  %v927_v20 = vrot.slane %v913_v0, %v3725_v42 }
 0x1e5   : > { %v935_v53 = vrot.slane %v907_v47, %v3725_v42  ;;  %v911_v57 = vpack.i.b16 %v910_v50, %v909_v49  ;;  %v928_v5 = vcombine.high %v907_v47, %v3731_v55  ;;  %v993_v22 = vrot.slane %v979_v1, %v3725_v42 }
 0x1e6   : > { %v601_v61 = vpop.permute.xlu1 %600  ;;  %v603_v4 = vpop.permute.xlu0 %602  ;;  %v610_v23 = vpack.i.b16 %v609_v3, %v608_v13  ;;  %v633_v26 = vrot.slane %v3745_v10, %v3725_v42 }
 0x1e7   : > { %v943_v59 = vcombine.low %v920_v52, %v935_v53  ;;  %v944_v60 = vcombine.high %v920_v52, %v935_v53  ;;  %v1001_v62 = vrot.slane %v911_v57, %v3725_v42  ;;  %v994_v63 = vcombine.high %v911_v57, %v3731_v55 }
 0x1e8   : > { %v616_v16 = vshrl.u32 %v601_v61, 16  ;;  %v614_v17 = vpack.i.b16 %v603_v4, %v601_v61  ;;  %v942_v24 = vrot.slane %v928_v5, %v3725_v42  ;;  %v617_v28 = vshrl.u32 %v603_v4, 16 }
 0x1e9   : > { %v951_v8 = vrot.slane %v943_v59, %v3734_v58  ;;  %v958_v9 = vrot.slane %v944_v60, %v3734_v58  ;;  %v1009_v12 = vcombine.low %v986_v2, %v1001_v62  ;;  %v1008_v14 = vrot.slane %v994_v63, %v3725_v42 }
 0x1ea   : > { %v1010_v15 = vcombine.high %v986_v2, %v1001_v62  ;;  %v592_v18 = vpop.permute.xlu1 %591  ;;  %v648_v30 = vrot.slane %v614_v17, %v3725_v42  ;;  %v618_v34 = vpack.i.b16 %v617_v28, %v616_v16  ;;  %v692_v37 = vcombine.high %v610_v23, %v3731_v55 }
 0x1eb   : > { %v1045_v25 = vcombine.low %v951_v8, %v958_v9  ;;  %v1017_v27 = vrot.slane %v1009_v12, %v3734_v58  ;;  %v3166_v29 = vcombine.high %v951_v8, %v958_v9  ;;  %v594_v31 = vadd.f32 %v592_v18, %v3703_v19 }
 0x1ec   : > { %v1024_v32 = vrot.slane %v1010_v15, %v3734_v58  ;;  %v1025_v33 = vcombine.low %v993_v22, %v1008_v14  ;;  %v595_v35 = vadd.f32 %v592_v18, %v3705_v21  ;;  %v1026_v36 = vcombine.high %v993_v22, %v1008_v14 }
 0x1ed   : > { %v656_v38 = vcombine.low %v633_v26, %v648_v30  ;;  %v657_v39 = vcombine.high %v633_v26, %v648_v30  ;;  %v959_v40 = vcombine.low %v927_v20, %v942_v24  ;;  %v699_v41 = vrot.slane %v610_v23, %v3725_v42 }
 0x1ee   : > { %v714_v43 = vrot.slane %v618_v34, %v3725_v42  ;;  %v1052_v44 = vrot.slane %v1045_v25, %v3725_v42  ;;  %v3765_v46 = vpack.c.bf16 %v595_v35, %v594_v31  ;;  %v1060_v21 = vrot.slane %v3166_v29, %v3725_v42 }
 0x1ef   : > { %v664_v19 = vrot.slane %v656_v38, %v3734_v58  ;;  %v671_v45 = vrot.slane %v657_v39, %v3734_v58  ;;  %v960_v47 = vcombine.high %v927_v20, %v942_v24  ;;  %v1033_v48 = vrot.slane %v1025_v33, %v3734_v58 }
 0x1f0   : > { %v1070_v49 = vcombine.low %v1017_v27, %v1024_v32  ;;  %v722_v50 = vcombine.low %v699_v41, %v714_v43  ;;  %v1040_v51 = vrot.slane %v1026_v36, %v3734_v58  ;;  %v707_v52 = vcombine.high %v618_v34, %v3731_v55  ;;  %1170 = vrot.lane.b32.xlu1 %v3765_v46, %s3556_s24 }
 0x1f1   : > { %v723_v53 = vcombine.high %v699_v41, %v714_v43  ;;  %1172 = vrot.lane.b32.xlu0 %v3765_v46, %s3555_s21  ;;  %v3167_v56 = vcombine.high %v1017_v27, %v1024_v32  ;;  %v641_v57 = vcombine.high %v614_v17, %v3731_v55  ;;  %v758_v60 = vcombine.low %v664_v19, %v671_v45 }
 0x1f2   : > { %v730_v59 = vrot.slane %v722_v50, %v3734_v58  ;;  %v3162_v62 = vcombine.high %v664_v19, %v671_v45  ;;  %v1061_v63 = vcombine.low %v1052_v44, %v1060_v21  ;;  %v967_v0 = vrot.slane %v959_v40, %v3734_v58 }
 0x1f3   : > { %v737_v61 = vrot.slane %v723_v53, %v3734_v58  ;;  %v974_v1 = vrot.slane %v960_v47, %v3734_v58  ;;  %v626_v2 = vcombine.high %v3745_v10, %v3731_v55  ;;  %v1077_v3 = vrot.slane %v1070_v49, %v3725_v42 }
 0x1f4   : > { %v706_v4 = vrot.slane %v692_v37, %v3725_v42  ;;  %v721_v5 = vrot.slane %v707_v52, %v3725_v42  ;;  %1174 = vrot.lane.b32.xlu1 %v3765_v46, %s3557_s11  ;;  %v1120_v12 = vcombine.low %v1033_v48, %v1040_v51  ;;  %v655_v13 = vrot.slane %v641_v57, %v3725_v42 }
 0x1f5   : > { %v783_v8 = vcombine.low %v730_v59, %v737_v61  ;;  %v3163_v9 = vcombine.high %v730_v59, %v737_v61  ;;  %v765_v14 = vrot.slane %v758_v60, %v3725_v42  ;;  %v1085_v15 = vrot.slane %v3167_v56, %v3725_v42 }
 0x1f6   : > { %v773_v10 = vrot.slane %v3162_v62, %v3725_v42  ;;  %v1068_v18 = vrot.slane %v1061_v63, %v3734_v58  ;;  %v3169_v20 = vcombine.high %v1033_v48, %v1040_v51  ;;  %v640_v22 = vrot.slane %v626_v2, %v3725_v42 }
 0x1f7   : > { %v790_v16 = vrot.slane %v783_v8, %v3725_v42  ;;  %v798_v17 = vrot.slane %v3163_v9, %v3725_v42  ;;  %v1086_v23 = vcombine.low %v1077_v3, %v1085_v15  ;;  %v1095_v24 = vcombine.low %v967_v0, %v974_v1 }
 0x1f8   : > { %v3168_v25 = vcombine.high %v967_v0, %v974_v1  ;;  %v738_v26 = vcombine.low %v706_v4, %v721_v5  ;;  %v739_v28 = vcombine.high %v706_v4, %v721_v5  ;;  %v672_v27 = vcombine.low %v640_v22, %v655_v13 }
 0x1f9   : > { %v1093_v29 = vrot.slane %v1086_v23, %v3734_v58  ;;  %v799_v30 = vcombine.low %v790_v16, %v798_v17  ;;  %v673_v31 = vcombine.high %v640_v22, %v655_v13  ;;  %v774_v32 = vcombine.low %v765_v14, %v773_v10 }
 0x1fa   : > { %v1148_v33 = vshrl.u32 %v1068_v18, 16  ;;  %v1127_v34 = vrot.slane %v1120_v12, %v3725_v42  ;;  %v1135_v38 = vrot.slane %v3169_v20, %v3725_v42  ;;  %v1102_v39 = vrot.slane %v1095_v24, %v3725_v42 }
 0x1fb   : > { %v1147_v35 = vpack.i.b16 %v1093_v29, %v1068_v18  ;;  %v1149_v36 = vshrl.u32 %v1093_v29, 16  ;;  %v1094_v37 = vcombine.high %v1093_v29, %v3562_v54  ;;  %v1110_v40 = vrot.slane %v3168_v25, %v3725_v42 }
 0x1fc   : > { %v746_v41 = vrot.slane %v738_v26, %v3734_v58  ;;  %v753_v43 = vrot.slane %v739_v28, %v3734_v58  ;;  %v806_v45 = vrot.slane %v799_v30, %v3734_v58  ;;  %v1069_v21 = vcombine.high %v1068_v18, %v3562_v54 }
 0x1fd   : > { %v1461_v44 = vsel %vm1456_vm3, %v1147_v35, 0  ;;  %v1150_v19 = vpack.i.b16 %v1149_v36, %v1148_v33  ;;  %v680_v47 = vrot.slane %v672_v27, %v3734_v58  ;;  %v687_v48 = vrot.slane %v673_v31, %v3734_v58 }
 0x1fe   : > { %3279 = vmatpush3.bf16.xpose.msra.mxu1 %v1461_v44  ;;  %v781_v50 = vrot.slane %v774_v32, %v3734_v58  ;;  %v1155_v51 = vshrl.u32 %v1094_v37, 16  ;;  %v1136_v52 = vcombine.low %v1127_v34, %v1135_v38  ;;  %v833_v53 = vcombine.low %v746_v41, %v753_v43 }
 0x1ff   : > { %v1507_v49 = vsel %vm1456_vm3, %v1150_v19, 0  ;;  %3290 = vmatprep.subr.bf16.mxu1 %v3552_v7  ;;  %v3165_v56 = vcombine.high %v746_v41, %v753_v43  ;;  %v1153_v57 = vpack.i.b16 %v1094_v37, %v1069_v21  ;;  %v862_v59 = vshrl.u32 %v806_v45, 16 }
 0x200   : > { %3285 = vmatpush3.bf16.xpose.msra.mxu0 %v1507_v49  ;;  %v1154_v60 = vshrl.u32 %v1069_v21, 16  ;;  %v1111_v61 = vcombine.low %v1102_v39, %v1110_v40  ;;  %v808_v62 = vcombine.low %v680_v47, %v687_v48  ;;  %v3164_v63 = vcombine.high %v680_v47, %v687_v48 }
 0x201   : > { %3296 = vmatprep.subr.bf16.mxu0 %v3552_v7  ;;  %v860_v0 = vpack.i.b16 %v806_v45, %v781_v50  ;;  %v861_v1 = vshrl.u32 %v781_v50, 16  ;;  %v1143_v3 = vrot.slane %v1136_v52, %v3734_v58  ;;  %v840_v4 = vrot.slane %v833_v53, %v3725_v42 }
 0x202   : > { %v1156_v2 = vpack.i.b16 %v1155_v51, %v1154_v60  ;;  %v848_v5 = vrot.slane %v3165_v56, %v3725_v42  ;;  %v1553_v8 = vsel %vm1456_vm3, %v1153_v57, 0  ;;  %v807_v12 = vcombine.high %v806_v45, %v3562_v54 }
 0x203   : > { %v863_v9 = vpack.i.b16 %v862_v59, %v861_v1  ;;  %v1118_v13 = vrot.slane %v1111_v61, %v3734_v58  ;;  %v815_v14 = vrot.slane %v808_v62, %v3725_v42  ;;  %v823_v15 = vrot.slane %v3164_v63, %v3725_v42 }
 0x204   : > { %v1599_v10 = vsel %vm1456_vm3, %v1156_v2, 0  ;;  %v782_v16 = vcombine.high %v781_v50, %v3562_v54  ;;  %v1161_v17 = vshrl.u32 %v1143_v3, 16  ;;  %v849_v18 = vcombine.low %v840_v4, %v848_v5 }
 0x205   : > { %3281 = vmatmul.mubr.msk.bf16.vlgmr.msra.gmra.mrb[0].mxu1 %vm1456_vm3, %v860_v0  ;;  %v1159_v20 = vpack.i.b16 %v1143_v3, %v1118_v13  ;;  %v868_v22 = vshrl.u32 %v807_v12, 16  ;;  %v1160_v23 = vshrl.u32 %v1118_v13, 16  ;;  %v824_v24 = vcombine.low %v815_v14, %v823_v15 }
 0x206   : > { %3291 = vmatpush3.bf16.xpose.msra.mxu1 %v1553_v8  ;;  %3292 = vmatprep.mubr.msk.bf16.mxu1 %vm3553_vm1, %v3552_v7  ;;  %v866_v25 = vpack.i.b16 %v807_v12, %v782_v16  ;;  %v867_v26 = vshrl.u32 %v782_v16, 16  ;;  %v1144_v27 = vcombine.high %v1143_v3, %v3562_v54  ;;  %v856_v31 = vrot.slane %v849_v18, %v3734_v58 }
 0x207   : > { %3287 = vmatmul.mubr.msk.bf16.vlgmr.msra.gmra.mrb[4].mxu0 %vm1456_vm3, %v863_v9  ;;  %3302 = vmatprep.subr.bf16.mxu1 %v3552_v7  ;;  %v1162_v28 = vpack.i.b16 %v1161_v17, %v1160_v23  ;;  %v1645_v29 = vsel %vm1456_vm3, %v1159_v20, 0  ;;  %v1119_v32 = vcombine.high %v1118_v13, %v3562_v54  ;;  %v831_v34 = vrot.slane %v824_v24, %v3734_v58 }
 0x208   : > { %3297 = vmatpush3.bf16.xpose.msra.mxu0 %v1599_v10  ;;  %3298 = vmatprep.mubr.msk.bf16.mxu0 %vm3553_vm1, %v3552_v7  ;;  %v869_v30 = vpack.i.b16 %v868_v22, %v867_v26  ;;  %v1167_v35 = vshrl.u32 %v1144_v27, 16  ;;  %v874_v37 = vshrl.u32 %v856_v31, 16  ;;  %v857_v19 = vcombine.high %v856_v31, %v3562_v54 }
 0x209   : > { %3308 = vmatprep.subr.bf16.mxu0 %v3552_v7  ;;  %v1691_v33 = vsel %vm1456_vm3, %v1162_v28, 0  ;;  %v1165_v36 = vpack.i.b16 %v1144_v27, %v1119_v32  ;;  %v1166_v38 = vshrl.u32 %v1119_v32, 16  ;;  %v872_v39 = vpack.i.b16 %v856_v31, %v831_v34 }
 0x20a   : > { %v873_v40 = vshrl.u32 %v831_v34, 16  ;;  %v832_v21 = vcombine.high %v831_v34, %v3562_v54  ;;  %v880_v47 = vshrl.u32 %v857_v19, 16  ;;  %v1828_v51 = vand.u32 127, %v568_v6 }
 0x20b   : > { %v1168_v41 = vpack.i.b16 %v1167_v35, %v1166_v38  ;;  %v1737_v43 = vsel %vm1456_vm3, %v1165_v36, 0 }
 0x20c   : > { %v875_v44 = vpack.i.b16 %v874_v37, %v873_v40  ;;  %v878_v48 = vpack.i.b16 %v857_v19, %v832_v21  ;;  %v879_v49 = vshrl.u32 %v832_v21, 16  ;;  %vm3864_vm4 = vcmp.le.s32.totalorder %v1828_v51, %v3691_v11 }
 0x20d   : > { %3293 = vmatmul.mubr.msk.bf16.vlgmr.msra.gmra.mrb[4].mxu1 %vm1456_vm3, %v866_v25  ;;  %v1783_v45 = vsel %vm1456_vm3, %v1168_v41, 0 }
 0x20e   : > { %3303 = vmatpush3.bf16.xpose.msra.mxu1 %v1645_v29  ;;  %3304 = vmatprep.mubr.msk.bf16.mxu1 %vm3553_vm1, %v3552_v7  ;;  %v881_v50 = vpack.i.b16 %v880_v47, %v879_v49 }
 0x20f   : > { %3299 = vmatmul.mubr.msk.bf16.vlgmr.msra.gmra.mrb[8].mxu0 %vm1456_vm3, %v869_v30  ;;  %3314 = vmatprep.subr.bf16.mxu1 %v3552_v7 }
 0x210   : > { %3309 = vmatpush3.bf16.xpose.msra.mxu0 %v1691_v33  ;;  %3310 = vmatprep.mubr.msk.bf16.mxu0 %vm3553_vm1, %v3552_v7 }
 0x211   : > { %3320 = vmatprep.subr.bf16.mxu0 %v3552_v7 }
 0x215   : > { %3305 = vmatmul.mubr.msk.bf16.vlgmr.msra.gmra.mrb[8].mxu1 %vm1456_vm3, %v872_v39 }
 0x216   : > { %3315 = vmatpush3.bf16.xpose.msra.mxu1 %v1737_v43  ;;  %3316 = vmatprep.mubr.msk.bf16.mxu1 %vm3553_vm1, %v3552_v7 }
 0x217   : > { %3311 = vmatmul.mubr.msk.bf16.vlgmr.msra.gmra.mrb[12].mxu0 %vm1456_vm3, %v875_v44  ;;  %3326 = vmatprep.subr.bf16.mxu1 %v3552_v7 }
 0x218   : > { %3321 = vmatpush3.bf16.xpose.msra.mxu0 %v1783_v45  ;;  %3322 = vmatprep.mubr.msk.bf16.mxu0 %vm3553_vm1, %v3552_v7 }
 0x219   : > { %3332 = vmatprep.subr.bf16.mxu0 %v3552_v7 }
 0x21d   : > { %3317 = vmatmul.mubr.msk.bf16.vlgmr.msra.gmra.mrb[12].mxu1 %vm1456_vm3, %v878_v48 }
 0x21e   : > { %3328 = vmatprep.mubr.msk.bf16.mxu1 %vm3553_vm1, %v3552_v7 }
 0x21f   : > { %3323 = vmatmul.mubr.msk.bf16.vlgmr.msra.gmra.mrb[16].mxu0 %vm1456_vm3, %v881_v50 }
 0x220   : > { %3334 = vmatprep.mubr.msk.bf16.mxu0 %vm3553_vm1, %v3552_v7 }
 0x262   : > { %v1171_v19 = vpop.permute.xlu1 %1170 }
 0x263   : > { %v1173_v45 = vpop.permute.xlu0 %1172 }
 0x266   : > { %v1175_v21 = vpop.permute.xlu1 %1174 }
 0x2d8   : > { %v1497_v53 = vpop.f32.mrb[0].mxu1 }
 0x2d9   : > { %v3870_v56 = vsel %vm3864_vm4, %v1497_v53, -1e+30  ;;  %v3282_v57 = vpop.f32.mrb[1].mxu1 }
 0x2da   : > { %v1500_v59 = vpop.f32.mrb[2].mxu1  ;;  %v1543_v60 = vpop.f32.mrb[4].mxu0  ;;  %v1840_v61 = vsel %vm1456_vm3, %v3870_v56, -inf }
 0x2db   : > { %v1833_v62 = vsel %vm3864_vm4, %v1543_v60, -1e+30  ;;  %1841 = vmax.xlane.f32.xlu0 %v1840_v61  ;;  %v3283_v6 = vpop.f32.mrb[3].mxu1  ;;  %v3288_v63 = vpop.f32.mrb[5].mxu0 }
 0x2dc   : > { %v1546_v0 = vpop.f32.mrb[6].mxu0  ;;  %v1843_v1 = vsel %vm1456_vm3, %v1833_v62, -inf }
 0x2dd   : > { %1844 = vmax.xlane.f32.xlu1 %v1843_v1  ;;  %v3289_v2 = vpop.f32.mrb[7].mxu0 }
 0x2e0   : > { %v1589_v3 = vpop.f32.mrb[4].mxu1 }
 0x2e1   : > { %v3879_v4 = vsel %vm3864_vm4, %v1589_v3, -1e+30  ;;  %v3294_v5 = vpop.f32.mrb[5].mxu1 }
 0x2e2   : > { %v1592_v8 = vpop.f32.mrb[6].mxu1  ;;  %v1635_v9 = vpop.f32.mrb[8].mxu0  ;;  %v1846_v12 = vsel %vm1456_vm3, %v3879_v4, -inf }
 0x2e3   : > { %v3885_v13 = vsel %vm3864_vm4, %v1635_v9, -1e+30  ;;  %1847 = vmax.xlane.f32.xlu0 %v1846_v12  ;;  %v3295_v14 = vpop.f32.mrb[7].mxu1  ;;  %v3300_v15 = vpop.f32.mrb[9].mxu0 }
 0x2e4   : > { %v1638_v10 = vpop.f32.mrb[10].mxu0  ;;  %v1849_v17 = vsel %vm1456_vm3, %v3885_v13, -inf }
 0x2e5   : > { %v3301_v16 = vpop.f32.mrb[11].mxu0 }
 0x2e7   : > { %1850 = vmax.xlane.f32.xlu0 %v1849_v17 }
 0x2e8   : > { %v1681_v18 = vpop.f32.mrb[8].mxu1 }
 0x2e9   : > { %v3891_v20 = vsel %vm3864_vm4, %v1681_v18, -1e+30  ;;  %v3306_v22 = vpop.f32.mrb[9].mxu1 }
 0x2ea   : > { %v1684_v23 = vpop.f32.mrb[10].mxu1  ;;  %v1727_v24 = vpop.f32.mrb[12].mxu0  ;;  %v1852_v25 = vsel %vm1456_vm3, %v3891_v20, -inf }
 0x2eb   : > { %v1837_v26 = vsel %vm3864_vm4, %v1727_v24, -1e+30  ;;  %v3307_v28 = vpop.f32.mrb[11].mxu1  ;;  %1853 = vmax.xlane.f32.xlu1 %v1852_v25  ;;  %v3312_v27 = vpop.f32.mrb[13].mxu0 }
 0x2ec   : > { %v1730_v29 = vpop.f32.mrb[14].mxu0  ;;  %v1855_v30 = vsel %vm1456_vm3, %v1837_v26, -inf }
 0x2ed   : > { %1856 = vmax.xlane.f32.xlu0 %v1855_v30  ;;  %v3313_v31 = vpop.f32.mrb[15].mxu0 }
 0x2f0   : > { %v1773_v32 = vpop.f32.mrb[12].mxu1 }
 0x2f1   : > { %v1838_v33 = vsel %vm3864_vm4, %v1773_v32, -1e+30  ;;  %v3318_v34 = vpop.f32.mrb[13].mxu1 }
 0x2f2   : > { %v1776_v35 = vpop.f32.mrb[14].mxu1  ;;  %v1819_v36 = vpop.f32.mrb[16].mxu0  ;;  %v1858_v37 = vsel %vm1456_vm3, %v1838_v33, -inf }
 0x2f3   : > { %v1839_v38 = vsel %vm3864_vm4, %v1819_v36, -1e+30  ;;  %v3319_v39 = vpop.f32.mrb[15].mxu1  ;;  %1859 = vmax.xlane.f32.xlu1 %v1858_v37  ;;  %v3324_v40 = vpop.f32.mrb[17].mxu0 }
 0x2f4   : > { %v1822_v41 = vpop.f32.mrb[18].mxu0  ;;  %v1861_v43 = vsel %vm1456_vm3, %v1839_v38, -inf }
 0x2f5   : > { %1862 = vmax.xlane.f32.xlu0 %v1861_v43  ;;  %v3325_v44 = vpop.f32.mrb[19].mxu0 }
 0x304   : > { %1178 = vrot.lane.b32.xlu1 %v1171_v19, %s3559_s20 }
 0x30b   : > { %1176 = vrot.lane.b32.xlu0 %v3765_v46, %s3559_s20 }
 0x368   : > { %v1842_v47 = vpop.xlane.xlu0 %1841 }
 0x369   : > { %v1864_v48 = vsub.f32 %v3870_v56, %v1842_v47 }
 0x36a   : > { %v1845_v49 = vpop.xlane.xlu1 %1844 }
 0x36b   : > { %v1872_v50 = vmul.f32 1.442695, %v1864_v48  ;;  %v1865_v51 = vsub.f32 %v1833_v62, %v1845_v49 }
 0x36d   : > { %3475 = vpow2.f32 %v1872_v50  ;;  %v1874_v52 = vmul.f32 1.442695, %v1865_v51 }
 0x36f   : > { %3477 = vpow2.f32 %v1874_v52 }
 0x370   : > { %v1848_v56 = vpop.xlane.xlu0 %1847 }
 0x371   : > { %v1866_v61 = vsub.f32 %v3879_v4, %v1848_v56 }
 0x373   : > { %v1876_v0 = vmul.f32 1.442695, %v1866_v61 }
 0x374   : > { %v1851_v60 = vpop.xlane.xlu0 %1850 }
 0x375   : > { %v1867_v6 = vsub.f32 %v3885_v13, %v1851_v60  ;;  %3479 = vpow2.f32 %v1876_v0 }
 0x377   : > { %v3908_v53 = vpop.eup %3475  ;;  %v1878_v3 = vmul.f32 1.442695, %v1867_v6 }
 0x378   : > { %v1888_v57 = vsel %vm1456_vm3, %v3908_v53, 0.0  ;;  %v1854_v63 = vpop.xlane.xlu1 %1853 }
 0x379   : > { %v3912_v59 = vpop.eup %3477  ;;  %1889 = vadd.xlane.f32.xlu1 %v1888_v57  ;;  %v1868_v5 = vsub.f32 %v3891_v20, %v1854_v63  ;;  %3481 = vpow2.f32 %v1878_v3 }
 0x37a   : > { %v1891_v46 = vsel %vm1456_vm3, %v3912_v59, 0.0  ;;  %v1857_v62 = vpop.xlane.xlu0 %1856 }
 0x37b   : > { %1892 = vadd.xlane.f32.xlu0 %v1891_v46  ;;  %v1869_v1 = vsub.f32 %v1837_v26, %v1857_v62  ;;  %v1880_v14 = vmul.f32 1.442695, %v1868_v5 }
 0x37d   : > { %v1882_v9 = vmul.f32 1.442695, %v1869_v1 }
 0x37f   : > { %3483 = vpow2.f32 %v1882_v9  ;;  %v3921_v13 = vpop.eup %3479 }
 0x380   : > { %v1860_v8 = vpop.xlane.xlu1 %1859  ;;  %3485 = vpow2.f32 %v1880_v14  ;;  %v1894_v17 = vsel %vm1456_vm3, %v3921_v13, 0.0 }
 0x381   : > { %v1870_v15 = vsub.f32 %v1838_v33, %v1860_v8 }
 0x382   : > { %v1863_v2 = vpop.xlane.xlu0 %1862 }
 0x383   : > { %v1871_v12 = vsub.f32 %v1839_v38, %v1863_v2  ;;  %v1884_v4 = vmul.f32 1.442695, %v1870_v15  ;;  %v3923_v16 = vpop.eup %3481 }
 0x384   : > { %v1897_v20 = vsel %vm1456_vm3, %v3923_v16, 0.0  ;;  %v1179_v29 = vpop.permute.xlu1 %1178 }
 0x385   : > { %v1886_v10 = vmul.f32 1.442695, %v1871_v12  ;;  %v1189_v36 = vshrl.u32 %v1179_v29, 16 }
 0x386   : > { %v1177_v30 = vpop.permute.xlu0 %1176 }
 0x387   : > { %3487 = vpow2.f32 %v1886_v10  ;;  %v1188_v33 = vshrl.u32 %v1177_v30, 16  ;;  %v3945_v35 = vpack.i.b16 %v1179_v29, %v1177_v30 }
 0x388   : > { %3489 = vpow2.f32 %v1884_v4 }
 0x389   : > { %v3927_v18 = vpop.eup %3483  ;;  %v3949_v41 = vpack.i.b16 %v1189_v36, %v1188_v33  ;;  %v1207_v43 = vrot.slane %v3945_v35, %v3725_v42 }
 0x38a   : > { %1180 = vrot.lane.b32.xlu1 %v1173_v45, %s3559_s20  ;;  %v3931_v22 = vpop.eup %3485  ;;  %v1903_v23 = vsel %vm1456_vm3, %v3927_v18, 0.0 }
 0x38b   : > { %v1900_v25 = vsel %vm1456_vm3, %v3931_v22, 0.0  ;;  %v1273_v47 = vrot.slane %v3949_v41, %v3725_v42  ;;  %v1266_v36 = vcombine.high %v3949_v41, %v3731_v55 }
 0x391   : > { %1182 = vrot.lane.b32.xlu0 %v1175_v21, %s3559_s20  ;;  %v3935_v24 = vpop.eup %3487 }
 0x392   : > { %v3939_v26 = vpop.eup %3489  ;;  %v1909_v28 = vsel %vm1456_vm3, %v3935_v24, 0.0 }
 0x393   : > { %v1906_v27 = vsel %vm1456_vm3, %v3939_v26, 0.0 }
 0x3ae   : > { %1895 = vadd.xlane.f32.xlu1 %v1894_v17 }
 0x3b0   : > { %1898 = vadd.xlane.f32.xlu0 %v1897_v20 }
 0x3b2   : > { %1904 = vadd.xlane.f32.xlu1 %v1903_v23 }
 0x3b4   : > { %1901 = vadd.xlane.f32.xlu0 %v1900_v25 }
 0x3b6   : > { %1910 = vadd.xlane.f32.xlu1 %v1909_v28 }
 0x3b8   : > { %1907 = vadd.xlane.f32.xlu0 %v1906_v27 }
 0x406   : > { %v1890_v31 = vpop.xlane.xlu1 %1889 }
 0x407   : > { %3491 = vrcp.f32 %v1890_v31 }
 0x408   : > { %v1893_v32 = vpop.xlane.xlu0 %1892 }
 0x409   : > { %3493 = vrcp.f32 %v1893_v32 }
 0x40a   : > { %v1181_v34 = vpop.permute.xlu1 %1180 }
 0x40b   : > { %v1196_v38 = vshrl.u32 %v1181_v34, 16 }
 0x40c   : > { %v1183_v37 = vpop.permute.xlu0 %1182 }
 0x40d   : > { %v3947_v39 = vpack.i.b16 %v1183_v37, %v1181_v34  ;;  %v1197_v40 = vshrl.u32 %v1183_v37, 16 }
 0x40f   : > { %v1198_v44 = vpack.i.b16 %v1197_v40, %v1196_v38  ;;  %v1222_v19 = vrot.slane %v3947_v39, %v3725_v42  ;;  %v1215_v37 = vcombine.high %v3947_v39, %v3731_v55  ;;  %v1200_v40 = vcombine.high %v3945_v35, %v3731_v55 }
 0x410   : > { %v1280_v39 = vrot.slane %v1266_v36, %v3725_v42 }
 0x411   : > { %v1230_v45 = vcombine.low %v1207_v43, %v1222_v19  ;;  %v1231_v21 = vcombine.high %v1207_v43, %v1222_v19  ;;  %v1288_v48 = vrot.slane %v1198_v44, %v3725_v42  ;;  %v3492_v5 = vpop.eup %3491  ;;  %v1281_v33 = vcombine.high %v1198_v44, %v3731_v55 }
 0x412   : > { %v1913_v15 = vmul.f32 %v3492_v5, %v3908_v53  ;;  %v1229_v41 = vrot.slane %v1215_v37, %v3725_v42  ;;  %v1214_v44 = vrot.slane %v1200_v40, %v3725_v42 }
 0x413   : > { %v1238_v49 = vrot.slane %v1230_v45, %v3734_v58  ;;  %v1245_v50 = vrot.slane %v1231_v21, %v3734_v58  ;;  %v1296_v51 = vcombine.low %v1273_v47, %v1288_v48  ;;  %v1297_v52 = vcombine.high %v1273_v47, %v1288_v48  ;;  %v3494_v12 = vpop.eup %3493 }
 0x414   : > { %v1915_v23 = vmul.f32 %v3494_v12, %v3912_v59  ;;  %v1928_v32 = vpack.c.bf16 %v1913_v15, %v1913_v15  ;;  %v1295_v43 = vrot.slane %v1281_v33, %v3725_v42  ;;  %v1246_v21 = vcombine.low %v1214_v44, %v1229_v41 }
 0x415   : > { %v1332_v57 = vcombine.low %v1238_v49, %v1245_v50  ;;  %v3170_v46 = vcombine.high %v1238_v49, %v1245_v50  ;;  %v1304_v56 = vrot.slane %v1296_v51, %v3734_v58  ;;  %v1311_v60 = vrot.slane %v1297_v52, %v3734_v58 }
 0x416   : > { %v1929_v34 = vpack.c.bf16 %v1915_v23, %v1915_v23  ;;  %v1312_v19 = vcombine.low %v1280_v39, %v1295_v43  ;;  %v1313_v45 = vcombine.high %v1280_v39, %v1295_v43  ;;  %v1247_v47 = vcombine.high %v1214_v44, %v1229_v41 }
 0x417   : > { %v1339_v61 = vrot.slane %v1332_v57, %v3725_v42  ;;  %v1347_v62 = vrot.slane %v3170_v46, %v3725_v42  ;;  %v1357_v6 = vcombine.low %v1304_v56, %v1311_v60  ;;  %v3171_v63 = vcombine.high %v1304_v56, %v1311_v60 }
 0x418   : > { %v1320_v55 = vrot.slane %v1312_v19, %v3734_v58  ;;  %v1327_v35 = vrot.slane %v1313_v45, %v3734_v58  ;;  %v1254_v48 = vrot.slane %v1246_v21, %v3734_v58  ;;  %v1261_v49 = vrot.slane %v1247_v47, %v3734_v58 }
 0x419   : > { %v1348_v0 = vcombine.low %v1339_v61, %v1347_v62  ;;  %v1364_v1 = vrot.slane %v1357_v6, %v3725_v42  ;;  %v1372_v2 = vrot.slane %v3171_v63, %v3725_v42 }
 0x41a   : > { %v1407_v50 = vcombine.low %v1320_v55, %v1327_v35  ;;  %v3173_v51 = vcombine.high %v1320_v55, %v1327_v35  ;;  %v1382_v52 = vcombine.low %v1254_v48, %v1261_v49  ;;  %v3172_v57 = vcombine.high %v1254_v48, %v1261_v49 }
 0x41b   : > { %v1355_v3 = vrot.slane %v1348_v0, %v3734_v58  ;;  %v1373_v8 = vcombine.low %v1364_v1, %v1372_v2 }
 0x41c   : > { %v1414_v46 = vrot.slane %v1407_v50, %v3725_v42  ;;  %v1422_v56 = vrot.slane %v3173_v51, %v3725_v42  ;;  %v1389_v60 = vrot.slane %v1382_v52, %v3725_v42  ;;  %v1397_v61 = vrot.slane %v3172_v57, %v3725_v42 }
 0x41d   : > { %v1356_v9 = vcombine.high %v1355_v3, %v3562_v54  ;;  %v1380_v14 = vrot.slane %v1373_v8, %v3734_v58  ;;  %v1435_v4 = vshrl.u32 %v1355_v3, 16 }
 0x41e   : > { %v1423_v63 = vcombine.low %v1414_v46, %v1422_v56  ;;  %v1398_v1 = vcombine.low %v1389_v60, %v1397_v61 }
 0x41f   : > { %v1434_v10 = vpack.i.b16 %v1380_v14, %v1355_v3  ;;  %v1436_v17 = vshrl.u32 %v1380_v14, 16  ;;  %v1381_v20 = vcombine.high %v1380_v14, %v3562_v54  ;;  %v1441_v25 = vshrl.u32 %v1356_v9, 16 }
 0x420   : > { %v1430_v3 = vrot.slane %v1423_v63, %v3734_v58  ;;  %v1405_v5 = vrot.slane %v1398_v1, %v3734_v58 }
 0x421   : > { %v1941_v28 = vsel %vm1939_vm5, %v1434_v10, 0  ;;  %v1437_v27 = vpack.i.b16 %v1436_v17, %v1435_v4  ;;  %v1440_v29 = vpack.i.b16 %v1381_v20, %v1356_v9  ;;  %v1442_v30 = vshrl.u32 %v1381_v20, 16 }
 0x422   : > { %3327 = vmatpush3.bf16.msra.mxu1 %v1941_v28  ;;  %v1448_v9 = vshrl.u32 %v1430_v3, 16  ;;  %v1446_v10 = vpack.i.b16 %v1430_v3, %v1405_v5  ;;  %v1447_v4 = vshrl.u32 %v1405_v5, 16  ;;  %v1431_v28 = vcombine.high %v1430_v3, %v3562_v54 }
 0x423   : > { %v1987_v31 = vsel %vm1939_vm5, %v1437_v27, 0  ;;  %3338 = vmatprep.subr.bf16.mxu1 %v3552_v7  ;;  %v1443_v53 = vpack.i.b16 %v1442_v30, %v1441_v25  ;;  %v2033_v59 = vsel %vm1939_vm5, %v1440_v29, 0 }
 0x424   : > { %3333 = vmatpush3.bf16.msra.mxu0 %v1987_v31  ;;  %v1449_v25 = vpack.i.b16 %v1448_v9, %v1447_v4  ;;  %v2125_v29 = vsel %vm1939_vm5, %v1446_v10, 0 }
 0x425   : > { %3329 = vmatmul.mubr.msk.bf16.vlgmr.msra.gmra.mrb[16].mxu1 %vm1456_vm3, %v1928_v32  ;;  %3344 = vmatprep.subr.bf16.mxu0 %v3552_v7  ;;  %v2079_v38 = vsel %vm1939_vm5, %v1443_v53, 0  ;;  %v1454_v53 = vshrl.u32 %v1431_v28, 16 }
 0x426   : > { %3339 = vmatpush3.bf16.msra.mxu1 %v2033_v59  ;;  %3340 = vmatprep.mubr.msk.bf16.mxu1 %vm3553_vm1, %v3552_v7  ;;  %v2171_v32 = vsel %vm1939_vm5, %v1449_v25, 0 }
 0x427   : > { %3335 = vmatmul.mubr.msk.bf16.vlgmr.msra.gmra.mrb[20].mxu0 %vm1456_vm3, %v1929_v34  ;;  %3350 = vmatprep.subr.bf16.mxu1 %v3552_v7 }
 0x428   : > { %3345 = vmatpush3.bf16.msra.mxu0 %v2079_v38  ;;  %3346 = vmatprep.mubr.msk.bf16.mxu0 %vm3553_vm1, %v3552_v7 }
 0x429   : > { %3356 = vmatprep.subr.bf16.mxu0 %v3552_v7 }
 0x43b   : > { %v1896_v62 = vpop.xlane.xlu1 %1895 }
 0x43c   : > { %3495 = vrcp.f32 %v1896_v62 }
 0x43d   : > { %v1899_v6 = vpop.xlane.xlu0 %1898 }
 0x43e   : > { %3497 = vrcp.f32 %v1899_v6 }
 0x43f   : > { %v1905_v0 = vpop.xlane.xlu1 %1904 }
 0x440   : > { %3499 = vrcp.f32 %v1905_v0 }
 0x441   : > { %v1902_v2 = vpop.xlane.xlu0 %1901 }
 0x442   : > { %3501 = vrcp.f32 %v1902_v2 }
 0x443   : > { %v1911_v15 = vpop.xlane.xlu1 %1910 }
 0x445   : > { %v1908_v8 = vpop.xlane.xlu0 %1907 }
 0x446   : > { %v3496_v12 = vpop.eup %3495  ;;  %3503 = vrcp.f32 %v1908_v8 }
 0x447   : > { %v1917_v14 = vmul.f32 %v3496_v12, %v3921_v13  ;;  %3505 = vrcp.f32 %v1911_v15  ;;  %v1406_v13 = vcombine.high %v1405_v5, %v3562_v54 }
 0x448   : > { %v3498_v17 = vpop.eup %3497 }
 0x449   : > { %v1919_v20 = vmul.f32 %v3498_v17, %v3923_v16  ;;  %v1930_v23 = vpack.c.bf16 %v1917_v14, %v1917_v14  ;;  %v1452_v33 = vpack.i.b16 %v1431_v28, %v1406_v13  ;;  %v1453_v59 = vshrl.u32 %v1406_v13, 16 }
 0x44a   : > { %v3500_v27 = vpop.eup %3499 }
 0x44b   : > { %3341 = vmatmul.mubr.msk.bf16.vlgmr.msra.gmra.mrb[20].mxu1 %vm1456_vm3, %v1930_v23  ;;  %v1931_v30 = vpack.c.bf16 %v1919_v20, %v1919_v20  ;;  %v1923_v54 = vmul.f32 %v3500_v27, %v3927_v18  ;;  %v1455_v36 = vpack.i.b16 %v1454_v53, %v1453_v59  ;;  %v2217_v37 = vsel %vm1939_vm5, %v1452_v33, 0 }
 0x44c   : > { %v3502_v31 = vpop.eup %3501  ;;  %3351 = vmatpush3.bf16.msra.mxu1 %v2125_v29  ;;  %3352 = vmatprep.mubr.msk.bf16.mxu1 %vm3553_vm1, %v3552_v7 }
 0x44d   : > { %v1921_v16 = vmul.f32 %v3502_v31, %v3931_v22  ;;  %3347 = vmatmul.mubr.msk.bf16.vlgmr.msra.gmra.mrb[24].mxu0 %vm1456_vm3, %v1931_v30  ;;  %3362 = vmatprep.subr.bf16.mxu1 %v3552_v7  ;;  %v1933_v38 = vpack.c.bf16 %v1923_v54, %v1923_v54  ;;  %v2263_v18 = vsel %vm1939_vm5, %v1455_v36, 0 }
 0x44e   : > { %3357 = vmatpush3.bf16.msra.mxu0 %v2171_v32  ;;  %3358 = vmatprep.mubr.msk.bf16.mxu0 %vm3553_vm1, %v3552_v7 }
 0x44f   : > { %3368 = vmatprep.subr.bf16.mxu0 %v3552_v7  ;;  %v1932_v34 = vpack.c.bf16 %v1921_v16, %v1921_v16 }
 0x450   : > { %v3504_v22 = vpop.eup %3503 }
 0x451   : > { %v3506_v40 = vpop.eup %3505  ;;  %v1925_v43 = vmul.f32 %v3504_v22, %v3939_v26 }
 0x452   : > { %v1927_v39 = vmul.f32 %v3506_v40, %v3935_v24 }
 0x453   : > { %3353 = vmatmul.mubr.msk.bf16.vlgmr.msra.gmra.mrb[24].mxu1 %vm1456_vm3, %v1932_v34  ;;  %v1934_v41 = vpack.c.bf16 %v1925_v43, %v1925_v43 }
 0x454   : > { %3363 = vmatpush3.bf16.msra.mxu1 %v2217_v37  ;;  %3364 = vmatprep.mubr.msk.bf16.mxu1 %vm3553_vm1, %v3552_v7  ;;  %v1935_v44 = vpack.c.bf16 %v1927_v39, %v1927_v39 }
 0x455   : > { %3359 = vmatmul.mubr.msk.bf16.vlgmr.msra.gmra.mrb[28].mxu0 %vm1456_vm3, %v1933_v38  ;;  %3374 = vmatprep.subr.bf16.mxu1 %v3552_v7 }
 0x456   : > { %3369 = vmatpush3.bf16.msra.mxu0 %v2263_v18  ;;  %3370 = vmatprep.mubr.msk.bf16.mxu0 %vm3553_vm1, %v3552_v7 }
 0x457   : > { %3382 = vmatprep.subr.bf16.mxu0 %v3552_v7 }
 0x45b   : > { %3365 = vmatmul.mubr.msk.bf16.vlgmr.msra.gmra.mrb[28].mxu1 %vm1456_vm3, %v1934_v41 }
 0x45c   : > { %3378 = vmatprep.mubr.msk.bf16.mxu1 %vm3553_vm1, %v3552_v7 }
 0x45d   : > { %3371 = vmatmul.mubr.msk.bf16.vlgmr.msra.gmra.mrb[32].mxu0 %vm1456_vm3, %v1935_v44 }
 0x45e   : > { %3386 = vmatprep.mubr.msk.bf16.mxu0 %vm3553_vm1, %v3552_v7 }
 0x4f8   : > { %v1977_v26 = vpop.f32.mrb[16].mxu1 }
 0x4f9   : > { %v3330_v19 = vpop.f32.mrb[17].mxu1 }
 0x4fa   : > { %v1980_v45 = vpop.f32.mrb[18].mxu1  ;;  %v2023_v21 = vpop.f32.mrb[20].mxu0 }
 0x4fb   : > { %v3331_v47 = vpop.f32.mrb[19].mxu1  ;;  %v3336_v24 = vpop.f32.mrb[21].mxu0 }
 0x4fc   : > { %v2026_v55 = vpop.f32.mrb[22].mxu0 }
 0x4fd   : > { %v3337_v35 = vpop.f32.mrb[23].mxu0 }
 0x51e   : > { %v2069_v48 = vpop.f32.mrb[20].mxu1 }
 0x51f   : > { %v2305_v49 = vcombine.low %v1977_v26, %v2069_v48  ;;  %v2306_v50 = vcombine.high %v1977_v26, %v2069_v48  ;;  %v3342_v51 = vpop.f32.mrb[21].mxu1 }
 0x520   : > { %v2072_v52 = vpop.f32.mrb[22].mxu1  ;;  %v2115_v57 = vpop.f32.mrb[24].mxu0 }
 0x521   : > { %v2321_v46 = vcombine.low %v2023_v21, %v2115_v57  ;;  %v2322_v56 = vcombine.high %v2023_v21, %v2115_v57  ;;  %v3343_v60 = vpop.f32.mrb[23].mxu1  ;;  %v3348_v61 = vpop.f32.mrb[25].mxu0  ;;  %v2313_v6 = vrot.slane %v2305_v49, %v3725_v42  ;;  %v2320_v63 = vrot.slane %v2306_v50, %v3725_v42 }
 0x522   : > { %v2118_v62 = vpop.f32.mrb[26].mxu0 }
 0x523   : > { %v2329_v0 = vrot.slane %v2321_v46, %v3725_v42  ;;  %v2336_v1 = vrot.slane %v2322_v56, %v3725_v42  ;;  %v3349_v2 = vpop.f32.mrb[27].mxu0 }
 0x525   : > { %v2337_v3 = vcombine.low %v2313_v6, %v2329_v0  ;;  %v2338_v5 = vcombine.high %v2313_v6, %v2329_v0  ;;  %v2353_v8 = vcombine.low %v2320_v63, %v2336_v1  ;;  %v2354_v9 = vcombine.high %v2320_v63, %v2336_v1 }
 0x526   : > { %v2161_v12 = vpop.f32.mrb[24].mxu1 }
 0x527   : > { %v2345_v14 = vrot.slane %v2337_v3, %v3734_v58  ;;  %v2352_v15 = vrot.slane %v2338_v5, %v3734_v58  ;;  %v2361_v10 = vrot.slane %v2353_v8, %v3734_v58  ;;  %v2368_v4 = vrot.slane %v2354_v9, %v3734_v58  ;;  %v3354_v17 = vpop.f32.mrb[25].mxu1 }
 0x528   : > { %v2164_v20 = vpop.f32.mrb[26].mxu1  ;;  %v2207_v23 = vpop.f32.mrb[28].mxu0 }
 0x529   : > { %v2441_v25 = vcombine.low %v2345_v14, %v2352_v15  ;;  %v3190_v28 = vcombine.high %v2345_v14, %v2352_v15  ;;  %v2457_v27 = vcombine.low %v2361_v10, %v2368_v4  ;;  %v3191_v29 = vcombine.high %v2361_v10, %v2368_v4  ;;  %v3355_v30 = vpop.f32.mrb[27].mxu1  ;;  %v3360_v13 = vpop.f32.mrb[29].mxu0 }
 0x52a   : > { %v2210_v31 = vpop.f32.mrb[30].mxu0  ;;  %v3468_v13 = vld [vmem:[%s3658_s27 + $0x8] sm:$0xff]  }
 0x52b   : > { %v2448_v16 = vrot.slane %v2441_v25, %v3725_v42  ;;  %v2456_v32 = vrot.slane %v3190_v28, %v3725_v42  ;;  %v2464_v53 = vrot.slane %v2457_v27, %v3725_v42  ;;  %v2472_v54 = vrot.slane %v3191_v29, %v3725_v42  ;;  %v3361_v33 = vpop.f32.mrb[31].mxu0 }
 0x52d   : > { %v2474_v59 = vcombine.high %v2448_v16, %v2456_v32  ;;  %v2490_v34 = vcombine.high %v2464_v53, %v2472_v54  ;;  %v2473_v36 = vcombine.low %v2448_v16, %v2456_v32  ;;  %v2489_v22 = vcombine.low %v2464_v53, %v2472_v54 }
 0x52e   : > { %v2253_v37 = vpop.f32.mrb[28].mxu1 }
 0x52f   : > { %v2373_v38 = vcombine.low %v2161_v12, %v2253_v37  ;;  %v2374_v40 = vcombine.high %v2161_v12, %v2253_v37  ;;  %v3366_v43 = vpop.f32.mrb[29].mxu1  ;;  %v2488_v18 = vrot.slane %v2474_v59, %v3734_v58  ;;  %v2504_v39 = vrot.slane %v2490_v34, %v3734_v58  ;;  %v3467_v12 = vld [vmem:[%s3658_s27] sm:$0xff]  }
 0x530   : > { %v2256_v41 = vpop.f32.mrb[30].mxu1  ;;  %v2299_v44 = vpop.f32.mrb[32].mxu0  ;;  %v4056_v26 = vrot.slane %v2473_v36, %v3734_v58  ;;  %v4059_v19 = vrot.slane %v2489_v22, %v3734_v58  ;;  %3375 = vmatpush3.bf16.msra.mxu1 %v3467_v12  ;;  %v3469_v12 = vld [vmem:[%s3663_s30] sm:$0xff]  }
 0x531   : > { %v2389_v45 = vcombine.low %v2207_v23, %v2299_v44  ;;  %v2390_v21 = vcombine.high %v2207_v23, %v2299_v44  ;;  %v3367_v47 = vpop.f32.mrb[31].mxu1  ;;  %v3372_v24 = vpop.f32.mrb[33].mxu0  ;;  %v2507_v35 = vcombine.low %v2488_v18, %v2504_v39  ;;  %v2508_v50 = vcombine.high %v2488_v18, %v2504_v39  ;;  %3376 = vmatprep.subr.bf16.mxu1 %v3552_v7 }
 0x532   : > { %v2302_v55 = vpop.f32.mrb[34].mxu0  ;;  %v2505_v48 = vcombine.low %v4056_v26, %v4059_v19  ;;  %v2506_v49 = vcombine.high %v4056_v26, %v4059_v19  ;;  %v2381_v51 = vrot.slane %v2373_v38, %v3725_v42  ;;  %v2388_v52 = vrot.slane %v2374_v40, %v3725_v42  ;;  %v4092_v47 = vld [vmem:[%s3674_s22] sm:$0xff]  ;;  %3383 = vmatpush3.bf16.msra.mxu0 %v3469_v12 }
 0x533   : > { %v2397_v57 = vrot.slane %v2389_v45, %v3725_v42  ;;  %v2404_v46 = vrot.slane %v2390_v21, %v3725_v42  ;;  %v3373_v56 = vpop.f32.mrb[35].mxu0  ;;  %v2616_v21 = vsub.s32 3, %v3691_v11  ;;  %3384 = vmatprep.subr.bf16.mxu0 %v3552_v7 }
 0x534   : > { %3377 = vmatpush3.bf16.msra.mxu1 %v3468_v13  ;;  %v3517_v56 = vld [vmem:[#allocation2 + $0x8] sm:$0xff] }
 0x535   : > { %v2405_v60 = vcombine.low %v2381_v51, %v2397_v57  ;;  %v2406_v61 = vcombine.high %v2381_v51, %v2397_v57  ;;  %v2421_v62 = vcombine.low %v2388_v52, %v2404_v46  ;;  %v2422_v6 = vcombine.high %v2388_v52, %v2404_v46  ;;  %3390 = vmatprep.subr.bf16.mxu1 %v3552_v7  ;;  %v3516_v52 = vld [vmem:[#allocation2] sm:$0xff] }
 0x536   : > { %v2617_v24 = vrot.slane %v4092_v47, %v2616_v21 }
 0x537   : > { %v2413_v63 = vrot.slane %v2405_v60, %v3734_v58  ;;  %v2420_v0 = vrot.slane %v2406_v61, %v3734_v58  ;;  %v2429_v1 = vrot.slane %v2421_v62, %v3734_v58  ;;  %v2436_v2 = vrot.slane %v2422_v6, %v3734_v58 }
 0x539   : > { %v2509_v3 = vcombine.low %v2413_v63, %v2420_v0  ;;  %v3192_v5 = vcombine.high %v2413_v63, %v2420_v0  ;;  %v2525_v8 = vcombine.low %v2429_v1, %v2436_v2  ;;  %v3193_v9 = vcombine.high %v2429_v1, %v2436_v2 }
 0x53b   : > { %v2516_v14 = vrot.slane %v2509_v3, %v3725_v42  ;;  %v2524_v15 = vrot.slane %v3192_v5, %v3725_v42  ;;  %v2532_v10 = vrot.slane %v2525_v8, %v3725_v42  ;;  %v2540_v4 = vrot.slane %v3193_v9, %v3725_v42 }
 0x53d   : > { %v2542_v17 = vcombine.high %v2516_v14, %v2524_v15  ;;  %v2558_v20 = vcombine.high %v2532_v10, %v2540_v4  ;;  %v2541_v23 = vcombine.low %v2516_v14, %v2524_v15  ;;  %v2557_v25 = vcombine.low %v2532_v10, %v2540_v4  ;;  %v3470_v14 = vld [vmem:[%s3663_s30 + $0x8] sm:$0xff]   ;;  %v3471_v15 = vld [vmem:[%s3669_s19] sm:$0xff]  }
 0x53e   : > { %3385 = vmatpush3.bf16.msra.mxu0 %v3470_v14  ;;  %v3472_v10 = vld [vmem:[%s3669_s19 + $0x8] sm:$0xff]   ;;  %v2897_v14 = vsub.s32 7, %v3691_v11 }
 0x53f   : > { %v2556_v28 = vrot.slane %v2542_v17, %v3734_v58  ;;  %v2572_v27 = vrot.slane %v2558_v20, %v3734_v58  ;;  %v2549_v29 = vrot.slane %v2541_v23, %v3734_v58  ;;  %v2565_v30 = vrot.slane %v2557_v25, %v3734_v58 }
 0x541   : > { %v2575_v31 = vcombine.low %v2556_v28, %v2572_v27  ;;  %v2574_v16 = vcombine.high %v2549_v29, %v2565_v30  ;;  %v2573_v32 = vcombine.low %v2549_v29, %v2565_v30  ;;  %v2576_v42 = vcombine.high %v2556_v28, %v2572_v27 }
 0x542   : > { %v2705_v27 = vsub.s32 4, %v3691_v11 }
 0x543   : > { %v3455_v53 = vpack.i.bf16 %v2575_v31, %v2507_v35  ;;  %v3450_v54 = vpack.i.bf16 %v2574_v16, %v2506_v49  ;;  %v3460_v33 = vpack.i.bf16 %v2576_v42, %v2508_v50  ;;  %v2711_v31 = vsub.s32 5, %v3691_v11 }
 0x544   : > { %v2706_v30 = vrot.slane %v4092_v47, %v2705_v27 }
 0x545   : > { %3456 = vrot.lane.b32.xlu1 %v3455_v53, %s3563_s23  ;;  %3451 = vrot.lane.b32.xlu0 %v3450_v54, %s3564_s25  ;;  %v2712_v53 = vrot.slane %v4092_v47, %v2711_v31  ;;  %v3208_v31 = vld [vmem:[%s4171_s9] ss:$0 sm:$0xff] (!%p3207_p6) }
 0x549   : > { %3461 = vrot.lane.b32.xlu1 %v3460_v33, %s3565_s26 }
 0x5b7   : > { %v3457_v59 = vpop.permute.xlu1 %3456  ;;  %v3452_v34 = vpop.permute.xlu0 %3451 }
 0x5b8   : > { %v3454_v58 = vunpack.i.h.bf16 %v3452_v34  ;;  %v3453_v36 = vunpack.i.l.bf16 %v3452_v34  ;;  %v3459_v22 = vunpack.i.h.bf16 %v3457_v59  ;;  %v3458_v37 = vunpack.i.l.bf16 %v3457_v59 }
 0x5ba   : > { %v2601_v38 = vsel %vm1456_vm3, %v2505_v48, %v3453_v36  ;;  %v2602_v40 = vsel %vm1456_vm3, %v2573_v32, %v3454_v58  ;;  %v3473_v58 = vld [vmem:[%s3669_s19 + $0x10] sm:$0xff]   ;;  %v3474_v36 = vld [vmem:[%s3669_s19 + $0x18] sm:$0xff]  }
 0x5bb   : > { %v3462_v43 = vpop.permute.xlu1 %3461  ;;  %v2604_v41 = vsel %vm2603_vm6, %v2601_v38, %v3458_v37  ;;  %v2605_v44 = vsel %vm2603_vm6, %v2602_v40, %v3459_v22  ;;  %v3197_v22 = vld [vmem:[%s4176_s28] ss:$0 sm:$0xff] }
 0x5bc   : > { %v3464_v18 = vunpack.i.h.bf16 %v3462_v43  ;;  %v3463_v39 = vunpack.i.l.bf16 %v3462_v43 }
 0x5be   : > { %v2607_v26 = vsel %vm2606_vm7, %v2604_v41, %v3463_v39  ;;  %v2608_v19 = vsel %vm2606_vm7, %v2605_v44, %v3464_v18 }
 0x5bf   : > { %v2613_v45 = vpack.c.bf16 %v2608_v19, %v2607_v26  ;;  %v2796_v19 = vsub.s32 6, %v3691_v11  ;;  %v3518_v11 = vld [vmem:[%s4170_s8] sm:$0xff] (!%p3207_p6)  }
 0x5c1   : > { %3379 = vmatmul.mubr.msk.bf16.vlgmr.msra.gmra.mrb[32].mxu1 %vm523_vm2, %v2613_v45 }
 0x5c2   : > { %3398 = vmatprep.mubr.msk.bf16.mxu1 %vm3553_vm1, %v3552_v7  ;;  %3391 = vmatpush3.bf16.msra.mxu1 %v3471_v15  ;;  %v2898_v15 = vrot.slane %v4092_v47, %v2897_v14 }
 0x5c3   : > { %3392 = vmatprep.subr.bf16.mxu1 %v3552_v7 }
 0x5c6   : > { %3393 = vmatpush3.bf16.msra.mxu1 %v3472_v10 }
 0x5c7   : > { %3394 = vmatprep.subr.bf16.mxu1 %v3552_v7 }
 0x5ca   : > { %3395 = vmatpush3.bf16.msra.mxu1 %v3473_v58 }
 0x5cb   : > { %3396 = vmatprep.subr.bf16.mxu1 %v3552_v7  ;;  %v2797_v7 = vrot.slane %v4092_v47, %v2796_v19  ;;  %v3566_v47 = vmov (!%p3207_p6), 0.0  }
 0x5cc   : > { %3402 = vmatprep.subr.bf16.mxu0 (!%p3207_p6), %v3566_v47 }
 0x5ce   : > { %3397 = vmatpush3.bf16.msra.mxu1 %v3474_v36 }
 0x694   : > { %v2667_v55 = vpop.f32.mrb[32].mxu1 }
 0x695   : > { %v2668_v35 = vadd.f32 %v2667_v55, %v2617_v24  ;;  %v3380_v48 = vpop.f32.mrb[33].mxu1 }
 0x696   : > { %v2670_v49 = vpop.f32.mrb[34].mxu1 }
 0x697   : > { %v2671_v50 = vadd.f32 %v2670_v49, %v2617_v24  ;;  %v3381_v51 = vpop.f32.mrb[35].mxu1  ;;  %v2674_v57 = vadd.f32 %v3516_v52, %v2668_v35 }
 0x699   : > { %v2676_v46 = vsel %vm523_vm2, %v2674_v57, 0.0  ;;  %v2675_v60 = vadd.f32 %v3517_v56, %v2671_v50 }
 0x69a   : > { %2677 = vadd.xlane.f32.xlu0 %v2676_v46 }
 0x69b   : > { %v2679_v61 = vsel %vm523_vm2, %v2675_v60, 0.0 }
 0x69c   : > { %2680 = vadd.xlane.f32.xlu1 %v2679_v61 }
 0x727   : > { %v2678_v62 = vpop.xlane.xlu0 %2677 }
 0x728   : > { %v2683_v6 = vmul.f32 0.03125, %v2678_v62 }
 0x729   : > { %v2681_v63 = vpop.xlane.xlu1 %2680 }
 0x72a   : > { %v2685_v0 = vsub.f32 %v2674_v57, %v2683_v6  ;;  %v2684_v1 = vmul.f32 0.03125, %v2681_v63 }
 0x72c   : > { %v2686_v2 = vsub.f32 %v2675_v60, %v2684_v1  ;;  %v2687_v3 = vmul.f32 %v2685_v0, %v2685_v0 }
 0x72e   : > { %v2689_v5 = vsel %vm523_vm2, %v2687_v3, 0.0  ;;  %v2688_v8 = vmul.f32 %v2686_v2, %v2686_v2 }
 0x72f   : > { %2690 = vadd.xlane.f32.xlu0 %v2689_v5 }
 0x730   : > { %v2692_v9 = vsel %vm523_vm2, %v2688_v8, 0.0 }
 0x733   : > { %2693 = vadd.xlane.f32.xlu0 %v2692_v9 }
 0x7bc   : > { %v2691_v4 = vpop.xlane.xlu0 %2690 }
 0x7bd   : > { %v2695_v17 = vmul.f32 0.03125, %v2691_v4 }
 0x7bf   : > { %v2697_v20 = vadd.f32 1e-05, %v2695_v17 }
 0x7c0   : > { %v2694_v23 = vpop.xlane.xlu0 %2693 }
 0x7c1   : > { %3507 = vrsqrt.f32 %v2697_v20  ;;  %v2696_v25 = vmul.f32 0.03125, %v2694_v23  ;;  %v3206_v20 = vld [vmem:[%s3674_s22 + $0x8] ss:$0 sm:$0xff] }
 0x7c3   : > { %v2698_v28 = vadd.f32 1e-05, %v2696_v25 }
 0x7c5   : > { %3509 = vrsqrt.f32 %v2698_v28 }
 0x7cb   : > { %v3508_v29 = vpop.eup %3507 }
 0x7cc   : > { %v2701_v13 = vmul.f32 %v3508_v29, %v2685_v0 }
 0x7ce   : > { %v2707_v32 = vmul.f32 %v2706_v30, %v2701_v13 }
 0x7cf   : > { %v3510_v16 = vpop.eup %3509 }
 0x7d0   : > { %v2702_v42 = vmul.f32 %v3510_v16, %v2686_v2  ;;  %v2713_v33 = vadd.f32 %v2712_v53, %v2707_v32 }
 0x7d2   : > { %v2708_v54 = vmul.f32 %v2706_v30, %v2702_v42  ;;  %v3519_v30 = vld [vmem:[%s4170_s8 + $0x8] sm:$0xff] (!%p3207_p6)  }
 0x7d4   : > { %v2714_v59 = vadd.f32 %v2712_v53, %v2708_v54 }
 0x7d6   : > { %v2719_v34 = vpack.c.bf16 %v2714_v59, %v2713_v33 }
 0x7d8   : > { %3387 = vmatmul.mubr.msk.bf16.vlgmr.msra.gmra.mrb[36].mxu0 %vm523_vm2, %v2719_v34 }
 0x7d9   : > { %3403 = vmatpush3.bf16.msra.mxu0 (!%p3207_p6), %v3518_v11  ;;  %3406 = vmatprep.mubr.msk.bf16.mxu0 (!%p3207_p6), %vm3567_vm9, %v3566_v47 }
 0x7da   : > { %3404 = vmatprep.subr.bf16.mxu0 (!%p3207_p6), %v3566_v47 }
 0x7dd   : > { %3405 = vmatpush3.bf16.msra.mxu0 (!%p3207_p6), %v3519_v30 }
 0x8ab   : > { %v2776_v37 = vpop.f32.mrb[36].mxu0 }
 0x8ac   : > { %v2777_v38 = vadd.f32 %v3197_v22, %v2776_v37  ;;  %v3388_v40 = vpop.f32.mrb[37].mxu0 }
 0x8ad   : > { %v2779_v43 = vpop.f32.mrb[38].mxu0 }
 0x8ae   : > { %v2780_v18 = vadd.f32 %v3197_v22, %v2779_v43  ;;  %v3389_v39 = vpop.f32.mrb[39].mxu0  ;;  %v2783_v41 = vmax.f32 %v2777_v38, 0.0 }
 0x8b0   : > { %v2784_v44 = vmax.f32 %v2780_v18, 0.0 }
 0x8b2   : > { %v2793_v26 = vpack.c.bf16 %v2784_v44, %v2783_v41 }
 0x8b4   : > { %3399 = vmatmul.mubr.msk.bf16.vlgmr.msra.gmra.mrb[36].mxu1 %vm2822_vm8, %v2793_v26 }
 0x987   : > { %v2860_v45 = vpop.f32.mrb[36].mxu1 }
 0x988   : > { %v2861_v21 = vadd.f32 %v2860_v45, %v2797_v7  ;;  %v3400_v24 = vpop.f32.mrb[37].mxu1 }
 0x989   : > { %v2863_v55 = vpop.f32.mrb[38].mxu1 }
 0x98a   : > { %v2864_v35 = vadd.f32 %v2863_v55, %v2797_v7  ;;  %v3401_v48 = vpop.f32.mrb[39].mxu1  ;;  %v2867_v49 = vadd.f32 %v2861_v21, %v2713_v33 }
 0x98c   : > { %v2869_v50 = vsel %vm523_vm2, %v2867_v49, 0.0  ;;  %v2868_v51 = vadd.f32 %v2864_v35, %v2714_v59 }
 0x98d   : > { %2870 = vadd.xlane.f32.xlu1 %v2869_v50 }
 0x98e   : > { %v2872_v52 = vsel %vm523_vm2, %v2868_v51, 0.0 }
 0x98f   : > { %2873 = vadd.xlane.f32.xlu0 %v2872_v52 }
 0xa1a   : > { %v2871_v57 = vpop.xlane.xlu1 %2870 }
 0xa1b   : > { %v2875_v46 = vmul.f32 0.03125, %v2871_v57 }
 0xa1c   : > { %v2874_v56 = vpop.xlane.xlu0 %2873 }
 0xa1d   : > { %v2877_v60 = vsub.f32 %v2867_v49, %v2875_v46  ;;  %v2876_v61 = vmul.f32 0.03125, %v2874_v56 }
 0xa1f   : > { %v2878_v62 = vsub.f32 %v2868_v51, %v2876_v61  ;;  %v2879_v6 = vmul.f32 %v2877_v60, %v2877_v60 }
 0xa21   : > { %v2881_v63 = vsel %vm523_vm2, %v2879_v6, 0.0  ;;  %v2880_v0 = vmul.f32 %v2878_v62, %v2878_v62 }
 0xa22   : > { %2882 = vadd.xlane.f32.xlu1 %v2881_v63 }
 0xa23   : > { %v2884_v1 = vsel %vm523_vm2, %v2880_v0, 0.0 }
 0xa24   : > { %2885 = vadd.xlane.f32.xlu0 %v2884_v1 }
 0xaaf   : > { %v2883_v2 = vpop.xlane.xlu1 %2882 }
 0xab0   : > { %v2887_v3 = vmul.f32 0.03125, %v2883_v2 }
 0xab1   : > { %v2886_v5 = vpop.xlane.xlu0 %2885 }
 0xab2   : > { %v2889_v8 = vadd.f32 1e-05, %v2887_v3  ;;  %v2888_v9 = vmul.f32 0.03125, %v2886_v5 }
 0xab4   : > { %3511 = vrsqrt.f32 %v2889_v8  ;;  %v2890_v12 = vadd.f32 1e-05, %v2888_v9 }
 0xab6   : > { %3513 = vrsqrt.f32 %v2890_v12 }
 0xabe   : > { %v3512_v10 = vpop.eup %3511 }
 0xabf   : > { %v2893_v4 = vmul.f32 %v3512_v10, %v2877_v60 }
 0xac0   : > { %v3514_v17 = vpop.eup %3513 }
 0xac1   : > { %v2899_v23 = vmul.f32 %v2898_v15, %v2893_v4  ;;  %v2894_v25 = vmul.f32 %v3514_v17, %v2878_v62  ;;  %2912 = sbr.rel (%p3207_p6) target bundleno = 3298 (0xce2), region = 68 }
 0xac3   : > { %v2905_v28 = vadd.f32 %v3206_v20, %v2899_v23  ;;  %v2900_v27 = vmul.f32 %v2898_v15, %v2894_v25 }
 0xac5   : > { %2907 = vst.msk [vmem:[#allocation2] sm:$0xff] %vm523_vm2, %v2905_v28  ;;  %v2906_v29 = vadd.f32 %v3206_v20, %v2900_v27 }
 0xac7   : > { %2908 = vst.msk [vmem:[#allocation2 + $0x8] sm:$0xff] %vm523_vm2, %v2906_v29  ;;  %v2917_v13 = vpack.c.bf16 (!%p3207_p6), %v2906_v29, %v2905_v28 }
 0xac9   : > { %3407 = vmatmul.mubr.msk.bf16.vlgmr.msra.gmra.mrb[0].mxu0 %vm523_vm2, %v2917_v13 }
 0xb9c   : > { %v2974_v16 = vpop.f32.mrb[0].mxu0 }
 0xb9d   : > { %v2975_v32 = vadd.f32 %v3208_v31, %v2974_v16  ;;  %v3408_v42 = vpop.f32.mrb[1].mxu0 }
 0xb9e   : > { %v2977_v53 = vpop.f32.mrb[2].mxu0 }
 0xb9f   : > { %v2978_v54 = vadd.f32 %v3208_v31, %v2977_v53  ;;  %v3409_v33 = vpop.f32.mrb[3].mxu0  ;;  %v2981_v59 = vsel %vm523_vm2, %v2975_v32, -inf }
 0xba0   : > { %2982 = vmax.xlane.f32.xlu0 %v2981_v59 }
 0xba1   : > { %v2984_v34 = vsel %vm523_vm2, %v2978_v54, -inf }
 0xba4   : > { %2985 = vmax.xlane.f32.xlu0 %v2984_v34 }
 0xc2d   : > { %v2983_v58 = vpop.xlane.xlu0 %2982 }
 0xc2e   : > { %v2987_v36 = vsub.f32 %v2975_v32, %v2983_v58 }
 0xc30   : > { %v2989_v22 = vmul.f32 1.442695, %v2987_v36 }
 0xc31   : > { %v2986_v37 = vpop.xlane.xlu0 %2985 }
 0xc32   : > { %v2988_v38 = vsub.f32 %v2978_v54, %v2986_v37  ;;  %3520 = vpow2.f32 %v2989_v22 }
 0xc34   : > { %v2991_v40 = vmul.f32 1.442695, %v2988_v38 }
 0xc36   : > { %3522 = vpow2.f32 %v2991_v40 }
 0xc3c   : > { %v3521_v43 = vpop.eup %3520 }
 0xc3d   : > { %v2993_v18 = vsel %vm523_vm2, %v3521_v43, 0.0 }
 0xc3e   : > { %2994 = vadd.xlane.f32.xlu1 %v2993_v18 }
 0xc40   : > { %v3523_v39 = vpop.eup %3522 }
 0xc41   : > { %v2996_v41 = vsel %vm523_vm2, %v3523_v39, 0.0 }
 0xc42   : > { %2997 = vadd.xlane.f32.xlu1 %v2996_v41 }
 0xccb   : > { %v2995_v44 = vpop.xlane.xlu1 %2994 }
 0xccc   : > { %3524 = vlog2.f32 %v2995_v44 }
 0xccf   : > { %v2998_v26 = vpop.xlane.xlu1 %2997 }
 0xcd0   : > { %3526 = vlog2.f32 %v2998_v26 }
 0xcd6   : > { %v3525_v19 = vpop.eup %3524 }
 0xcd7   : > { %v3000_v7 = vmul.f32 0.6931472, %v3525_v19 }
 0xcd9   : > { %v3003_v45 = vadd.f32 %v3000_v7, %v2983_v58 }
 0xcda   : > { %v3527_v21 = vpop.eup %3526 }
 0xcdb   : > { %v3005_v24 = vsub.f32 %v2975_v32, %v3003_v45  ;;  %v3002_v55 = vmul.f32 0.6931472, %v3527_v21 }
 0xcdd   : > { %3007 = vst.msk [vmem:[%s4172_s10] sm:$0xff] %vm523_vm2, %v3005_v24  ;;  %v3004_v35 = vadd.f32 %v3002_v55, %v2986_v37 }
 0xcdf   : > { %v3006_v48 = vsub.f32 %v2978_v54, %v3004_v35 }
 0xce1   : > { %3008 = vst.msk [vmem:[%s4172_s10 + $0x8] sm:$0xff] %vm523_vm2, %v3006_v48 }
 0xce2 PF: > { %s20_s15 = sadd.s32 1, %s3550_s15   ;;  %s4177_s12 = sld [smem:[#allocation3_spill]] }
 0xce3   : > { %p17_p7 = scmp.ge.s32.totalorder %s20_s15, 4   ;;  %s4178_s13 = smov %s3546_s14 }
 0xce5   :  { %19 = sbr.rel (!%p17_p7) target bundleno = 2 (0x2), region = 116 }
 0xce8   : > { %s4179_s14 = smov %s4177_s12 }

</bundles_post_ra>
